<compile_context>
chip_gen: v7x
topology: tpu7x:2x2x1
jax: 0.10.0
libtpu: 0.0.40
codegen_flags: <defaults>
</compile_context>

<pallas_src>
import functools

import jax
import jax.numpy as jnp
from jax import lax
from jax.experimental import pallas as pl
from jax.experimental.pallas import tpu as pltpu

NOUT = 10          # logical readout width (LILinearCell(h1, 10))
NPAD = 128         # lane-dense padded readout width

# norse LIFParameters defaults (method='super'; forward pass == heaviside).
TAU_SYN_INV = 200.0
TAU_MEM_INV = 100.0
V_TH = 1.0
V_RESET = 0.0
V_LEAK = 0.0


def _seqnet_kernel(dt, ts, tb, unroll,
                   x_ref, w0_ref, b0_ref, wo_ref, out_ref,
                   v0_ref, i0_ref, vo_ref, io_ref,
                   cur_ref, z_ref, jmp_ref):
    """One grid step == `ts` timesteps of the recurrence for one batch block."""
    d = x_ref.shape[-1]

    # Re-initialise neuron state at the start of every batch block (t == 0).
    @pl.when(pl.program_id(1) == 0)
    def _():
        v0_ref[...] = jnp.zeros_like(v0_ref)
        i0_ref[...] = jnp.zeros_like(i0_ref)
        vo_ref[...] = jnp.zeros_like(vo_ref)
        io_ref[...] = jnp.zeros_like(io_ref)

    alpha = dt * TAU_MEM_INV            # membrane integration rate
    syn_decay = 1.0 - dt * TAU_SYN_INV  # synaptic current decay per step

    # ---- fc0 hoisted out of the recurrence: one batched MXU matmul per grid
    # step (M = ts*tb), bias broadcast folded into the same pass.
    x_blk = x_ref[...].reshape(ts * tb, d)
    cur_ref[...] = (jnp.dot(x_blk, w0_ref[...],
                            preferred_element_type=jnp.float32)
                    + b0_ref[...])

    def _off(t):
        off = t * tb
        if not isinstance(off, int):
            off = pl.multiple_of(off, tb)
        return off

    # ---- lif0 recurrence: pure VPU work; spikes staged in VMEM for the
    # deferred readout matmul.  State math stays in float32.
    def lif_step(t, carry):
        off = _off(t)
        cur0 = cur_ref[pl.ds(off, tb), :]
        v0 = v0_ref[...]
        i0 = i0_ref[...]
        v_dec = v0 + alpha * ((V_LEAK - v0) + i0)
        spike = v_dec > V_TH                              # heaviside forward
        v0_ref[...] = jnp.where(spike, V_RESET, v_dec)    # single vselect reset
        i0_ref[...] = i0 * syn_decay + cur0               # decay + current jump
        z_ref[pl.ds(off, tb), :] = spike.astype(z_ref.dtype)
        return carry

    lax.fori_loop(0, ts, lif_step, 0, unroll=unroll)

    # ---- Readout input currents for all timesteps in one lane-dense matmul
    # (wo zero-padded to 128 output lanes in the wrapper).
    jmp_ref[...] = jnp.dot(z_ref[...], wo_ref[...],
                           preferred_element_type=jnp.float32)

    # ---- LILinearCell recurrence over the precomputed current jumps.
    def li_step(t, carry):
        off = _off(t)
        i_jump = io_ref[...] + jmp_ref[pl.ds(off, tb), :]
        v_new = vo_ref[...] + alpha * ((V_LEAK - vo_ref[...]) + i_jump)
        vo_ref[...] = v_new
        io_ref[...] = i_jump * syn_decay
        out_ref[t] = v_new.astype(out_ref.dtype)
        return carry

    lax.fori_loop(0, ts, li_step, 0, unroll=unroll)


def seq_net_svhn(x, w0, b0, wo, *, dt=1e-3, max_ts_per_step=32,
                 batch_block=None, compute_dtype=jnp.float32,
                 single_buffer_weights=False):
    """SeqNetSVHN forward.

    x : (T, B, 3, F, F)  same per-timestep NCHW layout as the PyTorch module.
    w0: (3*F*F, H)  fc0 weight (transposed vs torch);  b0: (H,)  fc0 bias.
    wo: (H, 10)     LILinearCell input_weights (transposed vs torch, no bias).
    Returns voltages: (T, B, 10) in x.dtype.

    Perf knobs: compute_dtype=jnp.bfloat16 feeds the MXU in bf16 (state math
    stays f32); batch_block (multiple of 8, or 16 for bf16) splits the batch
    grid axis, e.g. padded_B // 2 to use both TensorCores on v7x.
    """
    T, B = int(x.shape[0]), int(x.shape[1])
    D = int(x.shape[2] * x.shape[3] * x.shape[4])
    H = int(w0.shape[1])
    assert w0.shape[0] == D and b0.shape == (H,) and wo.shape == (H, NOUT)

    # Batch padding so every block's sublane dim is a clean multiple.
    bmult = 16 if compute_dtype == jnp.bfloat16 else 8
    B_pad = ((B + bmult - 1) // bmult) * bmult

    # Glue: flatten each timestep exactly like torch's `x[ts].flatten(1)`.
    x_flat = x.reshape(T, B, D)
    if B_pad != B:
        x_flat = jnp.pad(x_flat, ((0, 0), (0, B_pad - B), (0, 0)))
    x_flat = x_flat.astype(compute_dtype)

    w0_c = w0.astype(compute_dtype)
    b0_2d = b0.reshape(1, H).astype(jnp.float32)
    # Lane-dense readout: pad the 10 output columns up to 128 with zeros.
    wo_pad = jnp.zeros((H, NPAD), wo.dtype).at[:, :NOUT].set(wo)
    wo_pad = wo_pad.astype(compute_dtype)

    # Largest timestep block <= max_ts_per_step that divides T.
    ts = max(s for s in range(1, min(T, max_ts_per_step) + 1) if T % s == 0)

    # Batch tiling (parallel grid axis). Default: one full (padded) batch block.
    tb = B_pad if batch_block is None else int(batch_block)
    assert B_pad % tb == 0 and tb % bmult == 0, \
        f"batch_block must divide padded batch ({B_pad}) and be a multiple of {bmult}"
    grid = (B_pad // tb, T // ts)      # (batch blocks, time blocks)

    # Keep the inner recurrence visible to the LLO scheduler.
    unroll = True if ts <= 8 else 4

    kernel = functools.partial(_seqnet_kernel, float(dt), ts, tb, unroll)

    # Invariant weight operands don't need double-buffering (headroom on v7x).
    wkw = {"pipeline_mode": pl.Buffered(1)} if single_buffer_weights else {}

    # VMEM budget estimate (double-buffered x/out + weights + scratch) + headroom.
    esz = jnp.dtype(compute_dtype).itemsize
    osz = jnp.dtype(x.dtype).itemsize
    x_blk_b = ts * tb * D * esz
    out_blk_b = ts * tb * NPAD * osz
    w_b = D * H * esz + H * 4 + H * NPAD * esz
    scr_b = (2 * tb * H + 2 * tb * NPAD + ts * tb * H + ts * tb * NPAD) * 4 \
        + ts * tb * H * esz
    need = 2 * (x_blk_b + out_blk_b) + 2 * w_b + scr_b
    vmem_limit = int(min(100 * 2**20, max(32 * 2**20, 2 * need)))

    out_pad = pl.pallas_call(
        kernel,
        out_shape=jax.ShapeDtypeStruct((T, B_pad, NPAD), x.dtype),
        grid_spec=pltpu.PrefetchScalarGridSpec(
            num_scalar_prefetch=0,
            grid=grid,
            in_specs=[
                pl.BlockSpec((ts, tb, D), lambda b, t: (t, b, 0)),        # x
                pl.BlockSpec((D, H), lambda b, t: (0, 0), **wkw),         # fc0 W
                pl.BlockSpec((1, H), lambda b, t: (0, 0), **wkw),         # fc0 b
                pl.BlockSpec((H, NPAD), lambda b, t: (0, 0), **wkw),      # out W
            ],
            out_specs=pl.BlockSpec((ts, tb, NPAD), lambda b, t: (t, b, 0)),
            scratch_shapes=[
                pltpu.VMEM((tb, H), jnp.float32),            # lif0 membrane v
                pltpu.VMEM((tb, H), jnp.float32),            # lif0 synaptic i
                pltpu.VMEM((tb, NPAD), jnp.float32),         # readout LI v
                pltpu.VMEM((tb, NPAD), jnp.float32),         # readout LI i
                pltpu.VMEM((ts * tb, H), jnp.float32),       # fc0 currents
                pltpu.VMEM((ts * tb, H), compute_dtype),     # staged spikes
                pltpu.VMEM((ts * tb, NPAD), jnp.float32),    # readout jumps
            ],
        ),
        compiler_params=pltpu.CompilerParams(
            # Time carries recurrent state -> sequential ("arbitrary");
            # batch blocks are independent -> "parallel" (multi-TC sharding).
            dimension_semantics=("parallel", "arbitrary"),
            vmem_limit_bytes=vmem_limit),
    )(x_flat, w0_c, b0_2d, wo_pad)

    # Strip the batch and lane padding back to the logical (T, B, 10) result.
    return out_pad[:, :B, :NOUT]


def init_params(key, h1, feature_size):
    """fc0 (with bias) + LILinearCell weight, roughly torch-like init scales."""
    d = 3 * feature_size * feature_size
    k0, k1, k2 = jax.random.split(key, 3)
    bound = 1.0 / jnp.sqrt(float(d))
    w0 = jax.random.uniform(k0, (d, h1), jnp.float32, -bound, bound)
    b0 = jax.random.uniform(k1, (h1,), jnp.float32, -bound, bound)
    wo = jax.random.normal(k2, (h1, NOUT), jnp.float32) * jnp.sqrt(2.0 / NOUT)
    return w0, b0, wo


# TODO(synk): fc1/lif1 exist on the PyTorch module but are never used in its
# forward(), so they are deliberately not implemented in the kernel.

if __name__ == "__main__":
    # Small shapes consistent with the module: seq=8, batch=2, feature_size=16
    # (fc0 input = 3*16*16 = 768), h1=32.  Input layout (T, B, 3, F, F).
    T, B, F, H1 = 8, 2, 16, 32
    key = jax.random.PRNGKey(0)
    kx, kp = jax.random.split(key)
    x = jax.random.normal(kx, (T, B, 3, F, F), dtype=jnp.float32)
    w0, b0, wo = init_params(kp, H1, F)

    voltages = seq_net_svhn(x, w0, b0, wo, dt=1e-3)
    jax.block_until_ready(voltages)
    assert voltages.shape == (T, B, NOUT)
    assert bool(jnp.all(jnp.isfinite(voltages)))
    print("KERNEL_OK")
</pallas_src>

<mosaic_0001>
module attributes {stable_mosaic.version = 11 : i64} {
  func.func @_seqnet_kernel(%arg0: i32, %arg1: i32, %arg2: memref<8x8x768xf32, #tpu.memory_space<vmem>>, %arg3: memref<768x32xf32, #tpu.memory_space<vmem>>, %arg4: memref<1x32xf32, #tpu.memory_space<vmem>>, %arg5: memref<32x128xf32, #tpu.memory_space<vmem>>, %arg6: memref<8x8x128xf32, #tpu.memory_space<vmem>>, %arg7: memref<8x32xf32, #tpu.memory_space<vmem>>, %arg8: memref<8x32xf32, #tpu.memory_space<vmem>>, %arg9: memref<8x128xf32, #tpu.memory_space<vmem>>, %arg10: memref<8x128xf32, #tpu.memory_space<vmem>>, %arg11: memref<64x32xf32, #tpu.memory_space<vmem>>, %arg12: memref<64x32xf32, #tpu.memory_space<vmem>>, %arg13: memref<64x128xf32, #tpu.memory_space<vmem>>) attributes {dimension_semantics = [#tpu.dimension_semantics<parallel>, #tpu.dimension_semantics<arbitrary>], iteration_bounds = array<i64: 1, 1>, scalar_prefetch = 0 : i64, scratch_operands = 7 : i64, tpu.core_type = #tpu.core_type<tc>, window_params = [{transform_indices = @transform_0, window_bounds = array<i64: 8, 8, 768>}, {pipeline_mode = #tpu.pipeline_mode<synchronous>, transform_indices = @transform_1, window_bounds = array<i64: 768, 32>}, {pipeline_mode = #tpu.pipeline_mode<synchronous>, transform_indices = @transform_2, window_bounds = array<i64: 1, 32>}, {pipeline_mode = #tpu.pipeline_mode<synchronous>, transform_indices = @transform_3, window_bounds = array<i64: 32, 128>}, {transform_indices = @transform_4, window_bounds = array<i64: 8, 8, 128>}]} {
    %c0_i32 = arith.constant 0 : i32
    %0 = arith.cmpi eq, %arg1, %c0_i32 : i32
    %1 = arith.extui %0 : i1 to i32
    %c0_i32_0 = arith.constant 0 : i32
    %2 = arith.cmpi ne, %1, %c0_i32_0 : i32
    scf.if %2 {
      %cst_290 = arith.constant 0.000000e+00 : f32
      %391 = vector.broadcast %cst_290 : f32 to vector<8x32xf32>
      %c0_291 = arith.constant 0 : index
      %c0_292 = arith.constant 0 : index
      %392 = vector.load %arg7[%c0_291, %c0_292] : memref<8x32xf32, #tpu.memory_space<vmem>>, vector<8x32xf32>
      tpu.vector_store %arg7[%c0_291, %c0_292], %391 {strides = array<i32>} : memref<8x32xf32, #tpu.memory_space<vmem>>, vector<8x32xf32>,
      %cst_293 = arith.constant 0.000000e+00 : f32
      %393 = vector.broadcast %cst_293 : f32 to vector<8x32xf32>
      %c0_294 = arith.constant 0 : index
      %c0_295 = arith.constant 0 : index
      %394 = vector.load %arg8[%c0_294, %c0_295] : memref<8x32xf32, #tpu.memory_space<vmem>>, vector<8x32xf32>
      tpu.vector_store %arg8[%c0_294, %c0_295], %393 {strides = array<i32>} : memref<8x32xf32, #tpu.memory_space<vmem>>, vector<8x32xf32>,
      %cst_296 = arith.constant 0.000000e+00 : f32
      %395 = vector.broadcast %cst_296 : f32 to vector<8x128xf32>
      %c0_297 = arith.constant 0 : index
      %c0_298 = arith.constant 0 : index
      %396 = vector.load %arg9[%c0_297, %c0_298] : memref<8x128xf32, #tpu.memory_space<vmem>>, vector<8x128xf32>
      tpu.vector_store %arg9[%c0_297, %c0_298], %395 {strides = array<i32>} : memref<8x128xf32, #tpu.memory_space<vmem>>, vector<8x128xf32>,
      %cst_299 = arith.constant 0.000000e+00 : f32
      %397 = vector.broadcast %cst_299 : f32 to vector<8x128xf32>
      %c0_300 = arith.constant 0 : index
      %c0_301 = arith.constant 0 : index
      %398 = vector.load %arg10[%c0_300, %c0_301] : memref<8x128xf32, #tpu.memory_space<vmem>>, vector<8x128xf32>
      tpu.vector_store %arg10[%c0_300, %c0_301], %397 {strides = array<i32>} : memref<8x128xf32, #tpu.memory_space<vmem>>, vector<8x128xf32>,
    } else {
    }
    %c0 = arith.constant 0 : index
    %c0_1 = arith.constant 0 : index
    %c0_2 = arith.constant 0 : index
    %3 = vector.load %arg2[%c0, %c0_1, %c0_2] : memref<8x8x768xf32, #tpu.memory_space<vmem>>, vector<8x8x768xf32>
    %4 = vector.shape_cast %3 : vector<8x8x768xf32> to vector<64x768xf32>
    %c0_3 = arith.constant 0 : index
    %c0_4 = arith.constant 0 : index
    %5 = vector.load %arg3[%c0_3, %c0_4] : memref<768x32xf32, #tpu.memory_space<vmem>>, vector<768x32xf32>
    %cst = arith.constant dense<0.000000e+00> : vector<64x32xf32>
    %6 = tpu.matmul %4, %5, %cst {dimension_numbers = #tpu.dot_dimension_numbers<[1], [0], [0], [1], [0, 0, 1, 1], [], []>} : vector<64x768xf32>, vector<768x32xf32>, vector<64x32xf32> -> vector<64x32xf32>
    %c0_5 = arith.constant 0 : index
    %c0_6 = arith.constant 0 : index
    %7 = vector.load %arg4[%c0_5, %c0_6] : memref<1x32xf32, #tpu.memory_space<vmem>>, vector<1x32xf32>
    %8 = vector.broadcast %7 : vector<1x32xf32> to vector<64x32xf32>
    %9 = arith.addf %6, %8 : vector<64x32xf32>
    %c0_7 = arith.constant 0 : index
    %c0_8 = arith.constant 0 : index
    %10 = vector.load %arg11[%c0_7, %c0_8] : memref<64x32xf32, #tpu.memory_space<vmem>>, vector<64x32xf32>
    tpu.vector_store %arg11[%c0_7, %c0_8], %9 {strides = array<i32>} : memref<64x32xf32, #tpu.memory_space<vmem>>, vector<64x32xf32>,
    %c0_i32_9 = arith.constant 0 : i32
    %c8_i32 = arith.constant 8 : i32
    %11 = arith.muli %c0_i32_9, %c8_i32 : i32
    %12 = tpu.assume_multiple %11, 8 : i32
    %13 = arith.index_cast %12 : i32 to index
    %c0_10 = arith.constant 0 : index
    %14 = vector.load %arg11[%13, %c0_10] : memref<64x32xf32, #tpu.memory_space<vmem>>, vector<8x32xf32>
    %c0_11 = arith.constant 0 : index
    %c0_12 = arith.constant 0 : index
    %15 = vector.load %arg7[%c0_11, %c0_12] : memref<8x32xf32, #tpu.memory_space<vmem>>, vector<8x32xf32>
    %c0_13 = arith.constant 0 : index
    %c0_14 = arith.constant 0 : index
    %16 = vector.load %arg8[%c0_13, %c0_14] : memref<8x32xf32, #tpu.memory_space<vmem>>, vector<8x32xf32>
    %cst_15 = arith.constant 0.000000e+00 : f32
    %17 = vector.broadcast %cst_15 : f32 to vector<8x32xf32>
    %18 = arith.subf %17, %15 : vector<8x32xf32>
    %19 = arith.addf %18, %16 : vector<8x32xf32>
    %cst_16 = arith.constant 1.000000e-01 : f32
    %20 = vector.broadcast %cst_16 : f32 to vector<8x32xf32>
    %21 = arith.mulf %20, %19 : vector<8x32xf32>
    %22 = arith.addf %15, %21 : vector<8x32xf32>
    %cst_17 = arith.constant 1.000000e+00 : f32
    %23 = vector.broadcast %cst_17 : f32 to vector<8x32xf32>
    %24 = arith.cmpf ogt, %22, %23 : vector<8x32xf32>
    %cst_18 = arith.constant 0.000000e+00 : f32
    %25 = vector.broadcast %cst_18 : f32 to vector<8x32xf32>
    %26 = arith.select %24, %25, %22 : vector<8x32xi1>, vector<8x32xf32>
    %c0_19 = arith.constant 0 : index
    %c0_20 = arith.constant 0 : index
    %27 = vector.load %arg7[%c0_19, %c0_20] : memref<8x32xf32, #tpu.memory_space<vmem>>, vector<8x32xf32>
    tpu.vector_store %arg7[%c0_19, %c0_20], %26 {strides = array<i32>} : memref<8x32xf32, #tpu.memory_space<vmem>>, vector<8x32xf32>,
    %cst_21 = arith.constant 8.000000e-01 : f32
    %28 = vector.broadcast %cst_21 : f32 to vector<8x32xf32>
    %29 = arith.mulf %16, %28 : vector<8x32xf32>
    %30 = arith.addf %29, %14 : vector<8x32xf32>
    %c0_22 = arith.constant 0 : index
    %c0_23 = arith.constant 0 : index
    %31 = vector.load %arg8[%c0_22, %c0_23] : memref<8x32xf32, #tpu.memory_space<vmem>>, vector<8x32xf32>
    tpu.vector_store %arg8[%c0_22, %c0_23], %30 {strides = array<i32>} : memref<8x32xf32, #tpu.memory_space<vmem>>, vector<8x32xf32>,
    %32 = arith.extui %24 : vector<8x32xi1> to vector<8x32xi32>
    %33 = arith.sitofp %32 : vector<8x32xi32> to vector<8x32xf32>
    %34 = arith.index_cast %12 : i32 to index
    %c0_24 = arith.constant 0 : index
    %35 = vector.load %arg12[%34, %c0_24] : memref<64x32xf32, #tpu.memory_space<vmem>>, vector<8x32xf32>
    tpu.vector_store %arg12[%34, %c0_24], %33 {strides = array<i32>} : memref<64x32xf32, #tpu.memory_space<vmem>>, vector<8x32xf32>,
    %c1_i32 = arith.constant 1 : i32
    %c8_i32_25 = arith.constant 8 : i32
    %36 = arith.muli %c1_i32, %c8_i32_25 : i32
    %37 = tpu.assume_multiple %36, 8 : i32
    %38 = arith.index_cast %37 : i32 to index
    %c0_26 = arith.constant 0 : index
    %39 = vector.load %arg11[%38, %c0_26] : memref<64x32xf32, #tpu.memory_space<vmem>>, vector<8x32xf32>
    %c0_27 = arith.constant 0 : index
    %c0_28 = arith.constant 0 : index
    %40 = vector.load %arg7[%c0_27, %c0_28] : memref<8x32xf32, #tpu.memory_space<vmem>>, vector<8x32xf32>
    %c0_29 = arith.constant 0 : index
    %c0_30 = arith.constant 0 : index
    %41 = vector.load %arg8[%c0_29, %c0_30] : memref<8x32xf32, #tpu.memory_space<vmem>>, vector<8x32xf32>
    %cst_31 = arith.constant 0.000000e+00 : f32
    %42 = vector.broadcast %cst_31 : f32 to vector<8x32xf32>
    %43 = arith.subf %42, %40 : vector<8x32xf32>
    %44 = arith.addf %43, %41 : vector<8x32xf32>
    %cst_32 = arith.constant 1.000000e-01 : f32
    %45 = vector.broadcast %cst_32 : f32 to vector<8x32xf32>
    %46 = arith.mulf %45, %44 : vector<8x32xf32>
    %47 = arith.addf %40, %46 : vector<8x32xf32>
    %cst_33 = arith.constant 1.000000e+00 : f32
    %48 = vector.broadcast %cst_33 : f32 to vector<8x32xf32>
    %49 = arith.cmpf ogt, %47, %48 : vector<8x32xf32>
    %cst_34 = arith.constant 0.000000e+00 : f32
    %50 = vector.broadcast %cst_34 : f32 to vector<8x32xf32>
    %51 = arith.select %49, %50, %47 : vector<8x32xi1>, vector<8x32xf32>
    %c0_35 = arith.constant 0 : index
    %c0_36 = arith.constant 0 : index
    %52 = vector.load %arg7[%c0_35, %c0_36] : memref<8x32xf32, #tpu.memory_space<vmem>>, vector<8x32xf32>
    tpu.vector_store %arg7[%c0_35, %c0_36], %51 {strides = array<i32>} : memref<8x32xf32, #tpu.memory_space<vmem>>, vector<8x32xf32>,
    %cst_37 = arith.constant 8.000000e-01 : f32
    %53 = vector.broadcast %cst_37 : f32 to vector<8x32xf32>
    %54 = arith.mulf %41, %53 : vector<8x32xf32>
    %55 = arith.addf %54, %39 : vector<8x32xf32>
    %c0_38 = arith.constant 0 : index
    %c0_39 = arith.constant 0 : index
    %56 = vector.load %arg8[%c0_38, %c0_39] : memref<8x32xf32, #tpu.memory_space<vmem>>, vector<8x32xf32>
    tpu.vector_store %arg8[%c0_38, %c0_39], %55 {strides = array<i32>} : memref<8x32xf32, #tpu.memory_space<vmem>>, vector<8x32xf32>,
    %57 = arith.extui %49 : vector<8x32xi1> to vector<8x32xi32>
    %58 = arith.sitofp %57 : vector<8x32xi32> to vector<8x32xf32>
    %59 = arith.index_cast %37 : i32 to index
    %c0_40 = arith.constant 0 : index
    %60 = vector.load %arg12[%59, %c0_40] : memref<64x32xf32, #tpu.memory_space<vmem>>, vector<8x32xf32>
    tpu.vector_store %arg12[%59, %c0_40], %58 {strides = array<i32>} : memref<64x32xf32, #tpu.memory_space<vmem>>, vector<8x32xf32>,
    %c2_i32 = arith.constant 2 : i32
    %c8_i32_41 = arith.constant 8 : i32
    %61 = arith.muli %c2_i32, %c8_i32_41 : i32
    %62 = tpu.assume_multiple %61, 8 : i32
    %63 = arith.index_cast %62 : i32 to index
    %c0_42 = arith.constant 0 : index
    %64 = vector.load %arg11[%63, %c0_42] : memref<64x32xf32, #tpu.memory_space<vmem>>, vector<8x32xf32>
    %c0_43 = arith.constant 0 : index
    %c0_44 = arith.constant 0 : index
    %65 = vector.load %arg7[%c0_43, %c0_44] : memref<8x32xf32, #tpu.memory_space<vmem>>, vector<8x32xf32>
    %c0_45 = arith.constant 0 : index
    %c0_46 = arith.constant 0 : index
    %66 = vector.load %arg8[%c0_45, %c0_46] : memref<8x32xf32, #tpu.memory_space<vmem>>, vector<8x32xf32>
    %cst_47 = arith.constant 0.000000e+00 : f32
    %67 = vector.broadcast %cst_47 : f32 to vector<8x32xf32>
    %68 = arith.subf %67, %65 : vector<8x32xf32>
    %69 = arith.addf %68, %66 : vector<8x32xf32>
    %cst_48 = arith.constant 1.000000e-01 : f32
    %70 = vector.broadcast %cst_48 : f32 to vector<8x32xf32>
    %71 = arith.mulf %70, %69 : vector<8x32xf32>
    %72 = arith.addf %65, %71 : vector<8x32xf32>
    %cst_49 = arith.constant 1.000000e+00 : f32
    %73 = vector.broadcast %cst_49 : f32 to vector<8x32xf32>
    %74 = arith.cmpf ogt, %72, %73 : vector<8x32xf32>
    %cst_50 = arith.constant 0.000000e+00 : f32
    %75 = vector.broadcast %cst_50 : f32 to vector<8x32xf32>
    %76 = arith.select %74, %75, %72 : vector<8x32xi1>, vector<8x32xf32>
    %c0_51 = arith.constant 0 : index
    %c0_52 = arith.constant 0 : index
    %77 = vector.load %arg7[%c0_51, %c0_52] : memref<8x32xf32, #tpu.memory_space<vmem>>, vector<8x32xf32>
    tpu.vector_store %arg7[%c0_51, %c0_52], %76 {strides = array<i32>} : memref<8x32xf32, #tpu.memory_space<vmem>>, vector<8x32xf32>,
    %cst_53 = arith.constant 8.000000e-01 : f32
    %78 = vector.broadcast %cst_53 : f32 to vector<8x32xf32>
    %79 = arith.mulf %66, %78 : vector<8x32xf32>
    %80 = arith.addf %79, %64 : vector<8x32xf32>
    %c0_54 = arith.constant 0 : index
    %c0_55 = arith.constant 0 : index
    %81 = vector.load %arg8[%c0_54, %c0_55] : memref<8x32xf32, #tpu.memory_space<vmem>>, vector<8x32xf32>
    tpu.vector_store %arg8[%c0_54, %c0_55], %80 {strides = array<i32>} : memref<8x32xf32, #tpu.memory_space<vmem>>, vector<8x32xf32>,
    %82 = arith.extui %74 : vector<8x32xi1> to vector<8x32xi32>
    %83 = arith.sitofp %82 : vector<8x32xi32> to vector<8x32xf32>
    %84 = arith.index_cast %62 : i32 to index
    %c0_56 = arith.constant 0 : index
    %85 = vector.load %arg12[%84, %c0_56] : memref<64x32xf32, #tpu.memory_space<vmem>>, vector<8x32xf32>
    tpu.vector_store %arg12[%84, %c0_56], %83 {strides = array<i32>} : memref<64x32xf32, #tpu.memory_space<vmem>>, vector<8x32xf32>,
    %c3_i32 = arith.constant 3 : i32
    %c8_i32_57 = arith.constant 8 : i32
    %86 = arith.muli %c3_i32, %c8_i32_57 : i32
    %87 = tpu.assume_multiple %86, 8 : i32
    %88 = arith.index_cast %87 : i32 to index
    %c0_58 = arith.constant 0 : index
    %89 = vector.load %arg11[%88, %c0_58] : memref<64x32xf32, #tpu.memory_space<vmem>>, vector<8x32xf32>
    %c0_59 = arith.constant 0 : index
    %c0_60 = arith.constant 0 : index
    %90 = vector.load %arg7[%c0_59, %c0_60] : memref<8x32xf32, #tpu.memory_space<vmem>>, vector<8x32xf32>
    %c0_61 = arith.constant 0 : index
    %c0_62 = arith.constant 0 : index
    %91 = vector.load %arg8[%c0_61, %c0_62] : memref<8x32xf32, #tpu.memory_space<vmem>>, vector<8x32xf32>
    %cst_63 = arith.constant 0.000000e+00 : f32
    %92 = vector.broadcast %cst_63 : f32 to vector<8x32xf32>
    %93 = arith.subf %92, %90 : vector<8x32xf32>
    %94 = arith.addf %93, %91 : vector<8x32xf32>
    %cst_64 = arith.constant 1.000000e-01 : f32
    %95 = vector.broadcast %cst_64 : f32 to vector<8x32xf32>
    %96 = arith.mulf %95, %94 : vector<8x32xf32>
    %97 = arith.addf %90, %96 : vector<8x32xf32>
    %cst_65 = arith.constant 1.000000e+00 : f32
    %98 = vector.broadcast %cst_65 : f32 to vector<8x32xf32>
    %99 = arith.cmpf ogt, %97, %98 : vector<8x32xf32>
    %cst_66 = arith.constant 0.000000e+00 : f32
    %100 = vector.broadcast %cst_66 : f32 to vector<8x32xf32>
    %101 = arith.select %99, %100, %97 : vector<8x32xi1>, vector<8x32xf32>
    %c0_67 = arith.constant 0 : index
    %c0_68 = arith.constant 0 : index
    %102 = vector.load %arg7[%c0_67, %c0_68] : memref<8x32xf32, #tpu.memory_space<vmem>>, vector<8x32xf32>
    tpu.vector_store %arg7[%c0_67, %c0_68], %101 {strides = array<i32>} : memref<8x32xf32, #tpu.memory_space<vmem>>, vector<8x32xf32>,
    %cst_69 = arith.constant 8.000000e-01 : f32
    %103 = vector.broadcast %cst_69 : f32 to vector<8x32xf32>
    %104 = arith.mulf %91, %103 : vector<8x32xf32>
    %105 = arith.addf %104, %89 : vector<8x32xf32>
    %c0_70 = arith.constant 0 : index
    %c0_71 = arith.constant 0 : index
    %106 = vector.load %arg8[%c0_70, %c0_71] : memref<8x32xf32, #tpu.memory_space<vmem>>, vector<8x32xf32>
    tpu.vector_store %arg8[%c0_70, %c0_71], %105 {strides = array<i32>} : memref<8x32xf32, #tpu.memory_space<vmem>>, vector<8x32xf32>,
    %107 = arith.extui %99 : vector<8x32xi1> to vector<8x32xi32>
    %108 = arith.sitofp %107 : vector<8x32xi32> to vector<8x32xf32>
    %109 = arith.index_cast %87 : i32 to index
    %c0_72 = arith.constant 0 : index
    %110 = vector.load %arg12[%109, %c0_72] : memref<64x32xf32, #tpu.memory_space<vmem>>, vector<8x32xf32>
    tpu.vector_store %arg12[%109, %c0_72], %108 {strides = array<i32>} : memref<64x32xf32, #tpu.memory_space<vmem>>, vector<8x32xf32>,
    %c4_i32 = arith.constant 4 : i32
    %c8_i32_73 = arith.constant 8 : i32
    %111 = arith.muli %c4_i32, %c8_i32_73 : i32
    %112 = tpu.assume_multiple %111, 8 : i32
    %113 = arith.index_cast %112 : i32 to index
    %c0_74 = arith.constant 0 : index
    %114 = vector.load %arg11[%113, %c0_74] : memref<64x32xf32, #tpu.memory_space<vmem>>, vector<8x32xf32>
    %c0_75 = arith.constant 0 : index
    %c0_76 = arith.constant 0 : index
    %115 = vector.load %arg7[%c0_75, %c0_76] : memref<8x32xf32, #tpu.memory_space<vmem>>, vector<8x32xf32>
    %c0_77 = arith.constant 0 : index
    %c0_78 = arith.constant 0 : index
    %116 = vector.load %arg8[%c0_77, %c0_78] : memref<8x32xf32, #tpu.memory_space<vmem>>, vector<8x32xf32>
    %cst_79 = arith.constant 0.000000e+00 : f32
    %117 = vector.broadcast %cst_79 : f32 to vector<8x32xf32>
    %118 = arith.subf %117, %115 : vector<8x32xf32>
    %119 = arith.addf %118, %116 : vector<8x32xf32>
    %cst_80 = arith.constant 1.000000e-01 : f32
    %120 = vector.broadcast %cst_80 : f32 to vector<8x32xf32>
    %121 = arith.mulf %120, %119 : vector<8x32xf32>
    %122 = arith.addf %115, %121 : vector<8x32xf32>
    %cst_81 = arith.constant 1.000000e+00 : f32
    %123 = vector.broadcast %cst_81 : f32 to vector<8x32xf32>
    %124 = arith.cmpf ogt, %122, %123 : vector<8x32xf32>
    %cst_82 = arith.constant 0.000000e+00 : f32
    %125 = vector.broadcast %cst_82 : f32 to vector<8x32xf32>
    %126 = arith.select %124, %125, %122 : vector<8x32xi1>, vector<8x32xf32>
    %c0_83 = arith.constant 0 : index
    %c0_84 = arith.constant 0 : index
    %127 = vector.load %arg7[%c0_83, %c0_84] : memref<8x32xf32, #tpu.memory_space<vmem>>, vector<8x32xf32>
    tpu.vector_store %arg7[%c0_83, %c0_84], %126 {strides = array<i32>} : memref<8x32xf32, #tpu.memory_space<vmem>>, vector<8x32xf32>,
    %cst_85 = arith.constant 8.000000e-01 : f32
    %128 = vector.broadcast %cst_85 : f32 to vector<8x32xf32>
    %129 = arith.mulf %116, %128 : vector<8x32xf32>
    %130 = arith.addf %129, %114 : vector<8x32xf32>
    %c0_86 = arith.constant 0 : index
    %c0_87 = arith.constant 0 : index
    %131 = vector.load %arg8[%c0_86, %c0_87] : memref<8x32xf32, #tpu.memory_space<vmem>>, vector<8x32xf32>
    tpu.vector_store %arg8[%c0_86, %c0_87], %130 {strides = array<i32>} : memref<8x32xf32, #tpu.memory_space<vmem>>, vector<8x32xf32>,
    %132 = arith.extui %124 : vector<8x32xi1> to vector<8x32xi32>
    %133 = arith.sitofp %132 : vector<8x32xi32> to vector<8x32xf32>
    %134 = arith.index_cast %112 : i32 to index
    %c0_88 = arith.constant 0 : index
    %135 = vector.load %arg12[%134, %c0_88] : memref<64x32xf32, #tpu.memory_space<vmem>>, vector<8x32xf32>
    tpu.vector_store %arg12[%134, %c0_88], %133 {strides = array<i32>} : memref<64x32xf32, #tpu.memory_space<vmem>>, vector<8x32xf32>,
    %c5_i32 = arith.constant 5 : i32
    %c8_i32_89 = arith.constant 8 : i32
    %136 = arith.muli %c5_i32, %c8_i32_89 : i32
    %137 = tpu.assume_multiple %136, 8 : i32
    %138 = arith.index_cast %137 : i32 to index
    %c0_90 = arith.constant 0 : index
    %139 = vector.load %arg11[%138, %c0_90] : memref<64x32xf32, #tpu.memory_space<vmem>>, vector<8x32xf32>
    %c0_91 = arith.constant 0 : index
    %c0_92 = arith.constant 0 : index
    %140 = vector.load %arg7[%c0_91, %c0_92] : memref<8x32xf32, #tpu.memory_space<vmem>>, vector<8x32xf32>
    %c0_93 = arith.constant 0 : index
    %c0_94 = arith.constant 0 : index
    %141 = vector.load %arg8[%c0_93, %c0_94] : memref<8x32xf32, #tpu.memory_space<vmem>>, vector<8x32xf32>
    %cst_95 = arith.constant 0.000000e+00 : f32
    %142 = vector.broadcast %cst_95 : f32 to vector<8x32xf32>
    %143 = arith.subf %142, %140 : vector<8x32xf32>
    %144 = arith.addf %143, %141 : vector<8x32xf32>
    %cst_96 = arith.constant 1.000000e-01 : f32
    %145 = vector.broadcast %cst_96 : f32 to vector<8x32xf32>
    %146 = arith.mulf %145, %144 : vector<8x32xf32>
    %147 = arith.addf %140, %146 : vector<8x32xf32>
    %cst_97 = arith.constant 1.000000e+00 : f32
    %148 = vector.broadcast %cst_97 : f32 to vector<8x32xf32>
    %149 = arith.cmpf ogt, %147, %148 : vector<8x32xf32>
    %cst_98 = arith.constant 0.000000e+00 : f32
    %150 = vector.broadcast %cst_98 : f32 to vector<8x32xf32>
    %151 = arith.select %149, %150, %147 : vector<8x32xi1>, vector<8x32xf32>
    %c0_99 = arith.constant 0 : index
    %c0_100 = arith.constant 0 : index
    %152 = vector.load %arg7[%c0_99, %c0_100] : memref<8x32xf32, #tpu.memory_space<vmem>>, vector<8x32xf32>
    tpu.vector_store %arg7[%c0_99, %c0_100], %151 {strides = array<i32>} : memref<8x32xf32, #tpu.memory_space<vmem>>, vector<8x32xf32>,
    %cst_101 = arith.constant 8.000000e-01 : f32
    %153 = vector.broadcast %cst_101 : f32 to vector<8x32xf32>
    %154 = arith.mulf %141, %153 : vector<8x32xf32>
    %155 = arith.addf %154, %139 : vector<8x32xf32>
    %c0_102 = arith.constant 0 : index
    %c0_103 = arith.constant 0 : index
    %156 = vector.load %arg8[%c0_102, %c0_103] : memref<8x32xf32, #tpu.memory_space<vmem>>, vector<8x32xf32>
    tpu.vector_store %arg8[%c0_102, %c0_103], %155 {strides = array<i32>} : memref<8x32xf32, #tpu.memory_space<vmem>>, vector<8x32xf32>,
    %157 = arith.extui %149 : vector<8x32xi1> to vector<8x32xi32>
    %158 = arith.sitofp %157 : vector<8x32xi32> to vector<8x32xf32>
    %159 = arith.index_cast %137 : i32 to index
    %c0_104 = arith.constant 0 : index
    %160 = vector.load %arg12[%159, %c0_104] : memref<64x32xf32, #tpu.memory_space<vmem>>, vector<8x32xf32>
    tpu.vector_store %arg12[%159, %c0_104], %158 {strides = array<i32>} : memref<64x32xf32, #tpu.memory_space<vmem>>, vector<8x32xf32>,
    %c6_i32 = arith.constant 6 : i32
    %c8_i32_105 = arith.constant 8 : i32
    %161 = arith.muli %c6_i32, %c8_i32_105 : i32
    %162 = tpu.assume_multiple %161, 8 : i32
    %163 = arith.index_cast %162 : i32 to index
    %c0_106 = arith.constant 0 : index
    %164 = vector.load %arg11[%163, %c0_106] : memref<64x32xf32, #tpu.memory_space<vmem>>, vector<8x32xf32>
    %c0_107 = arith.constant 0 : index
    %c0_108 = arith.constant 0 : index
    %165 = vector.load %arg7[%c0_107, %c0_108] : memref<8x32xf32, #tpu.memory_space<vmem>>, vector<8x32xf32>
    %c0_109 = arith.constant 0 : index
    %c0_110 = arith.constant 0 : index
    %166 = vector.load %arg8[%c0_109, %c0_110] : memref<8x32xf32, #tpu.memory_space<vmem>>, vector<8x32xf32>
    %cst_111 = arith.constant 0.000000e+00 : f32
    %167 = vector.broadcast %cst_111 : f32 to vector<8x32xf32>
    %168 = arith.subf %167, %165 : vector<8x32xf32>
    %169 = arith.addf %168, %166 : vector<8x32xf32>
    %cst_112 = arith.constant 1.000000e-01 : f32
    %170 = vector.broadcast %cst_112 : f32 to vector<8x32xf32>
    %171 = arith.mulf %170, %169 : vector<8x32xf32>
    %172 = arith.addf %165, %171 : vector<8x32xf32>
    %cst_113 = arith.constant 1.000000e+00 : f32
    %173 = vector.broadcast %cst_113 : f32 to vector<8x32xf32>
    %174 = arith.cmpf ogt, %172, %173 : vector<8x32xf32>
    %cst_114 = arith.constant 0.000000e+00 : f32
    %175 = vector.broadcast %cst_114 : f32 to vector<8x32xf32>
    %176 = arith.select %174, %175, %172 : vector<8x32xi1>, vector<8x32xf32>
    %c0_115 = arith.constant 0 : index
    %c0_116 = arith.constant 0 : index
    %177 = vector.load %arg7[%c0_115, %c0_116] : memref<8x32xf32, #tpu.memory_space<vmem>>, vector<8x32xf32>
    tpu.vector_store %arg7[%c0_115, %c0_116], %176 {strides = array<i32>} : memref<8x32xf32, #tpu.memory_space<vmem>>, vector<8x32xf32>,
    %cst_117 = arith.constant 8.000000e-01 : f32
    %178 = vector.broadcast %cst_117 : f32 to vector<8x32xf32>
    %179 = arith.mulf %166, %178 : vector<8x32xf32>
    %180 = arith.addf %179, %164 : vector<8x32xf32>
    %c0_118 = arith.constant 0 : index
    %c0_119 = arith.constant 0 : index
    %181 = vector.load %arg8[%c0_118, %c0_119] : memref<8x32xf32, #tpu.memory_space<vmem>>, vector<8x32xf32>
    tpu.vector_store %arg8[%c0_118, %c0_119], %180 {strides = array<i32>} : memref<8x32xf32, #tpu.memory_space<vmem>>, vector<8x32xf32>,
    %182 = arith.extui %174 : vector<8x32xi1> to vector<8x32xi32>
    %183 = arith.sitofp %182 : vector<8x32xi32> to vector<8x32xf32>
    %184 = arith.index_cast %162 : i32 to index
    %c0_120 = arith.constant 0 : index
    %185 = vector.load %arg12[%184, %c0_120] : memref<64x32xf32, #tpu.memory_space<vmem>>, vector<8x32xf32>
    tpu.vector_store %arg12[%184, %c0_120], %183 {strides = array<i32>} : memref<64x32xf32, #tpu.memory_space<vmem>>, vector<8x32xf32>,
    %c7_i32 = arith.constant 7 : i32
    %c8_i32_121 = arith.constant 8 : i32
    %186 = arith.muli %c7_i32, %c8_i32_121 : i32
    %187 = tpu.assume_multiple %186, 8 : i32
    %188 = arith.index_cast %187 : i32 to index
    %c0_122 = arith.constant 0 : index
    %189 = vector.load %arg11[%188, %c0_122] : memref<64x32xf32, #tpu.memory_space<vmem>>, vector<8x32xf32>
    %c0_123 = arith.constant 0 : index
    %c0_124 = arith.constant 0 : index
    %190 = vector.load %arg7[%c0_123, %c0_124] : memref<8x32xf32, #tpu.memory_space<vmem>>, vector<8x32xf32>
    %c0_125 = arith.constant 0 : index
    %c0_126 = arith.constant 0 : index
    %191 = vector.load %arg8[%c0_125, %c0_126] : memref<8x32xf32, #tpu.memory_space<vmem>>, vector<8x32xf32>
    %cst_127 = arith.constant 0.000000e+00 : f32
    %192 = vector.broadcast %cst_127 : f32 to vector<8x32xf32>
    %193 = arith.subf %192, %190 : vector<8x32xf32>
    %194 = arith.addf %193, %191 : vector<8x32xf32>
    %cst_128 = arith.constant 1.000000e-01 : f32
    %195 = vector.broadcast %cst_128 : f32 to vector<8x32xf32>
    %196 = arith.mulf %195, %194 : vector<8x32xf32>
    %197 = arith.addf %190, %196 : vector<8x32xf32>
    %cst_129 = arith.constant 1.000000e+00 : f32
    %198 = vector.broadcast %cst_129 : f32 to vector<8x32xf32>
    %199 = arith.cmpf ogt, %197, %198 : vector<8x32xf32>
    %cst_130 = arith.constant 0.000000e+00 : f32
    %200 = vector.broadcast %cst_130 : f32 to vector<8x32xf32>
    %201 = arith.select %199, %200, %197 : vector<8x32xi1>, vector<8x32xf32>
    %c0_131 = arith.constant 0 : index
    %c0_132 = arith.constant 0 : index
    %202 = vector.load %arg7[%c0_131, %c0_132] : memref<8x32xf32, #tpu.memory_space<vmem>>, vector<8x32xf32>
    tpu.vector_store %arg7[%c0_131, %c0_132], %201 {strides = array<i32>} : memref<8x32xf32, #tpu.memory_space<vmem>>, vector<8x32xf32>,
    %cst_133 = arith.constant 8.000000e-01 : f32
    %203 = vector.broadcast %cst_133 : f32 to vector<8x32xf32>
    %204 = arith.mulf %191, %203 : vector<8x32xf32>
    %205 = arith.addf %204, %189 : vector<8x32xf32>
    %c0_134 = arith.constant 0 : index
    %c0_135 = arith.constant 0 : index
    %206 = vector.load %arg8[%c0_134, %c0_135] : memref<8x32xf32, #tpu.memory_space<vmem>>, vector<8x32xf32>
    tpu.vector_store %arg8[%c0_134, %c0_135], %205 {strides = array<i32>} : memref<8x32xf32, #tpu.memory_space<vmem>>, vector<8x32xf32>,
    %207 = arith.extui %199 : vector<8x32xi1> to vector<8x32xi32>
    %208 = arith.sitofp %207 : vector<8x32xi32> to vector<8x32xf32>
    %209 = arith.index_cast %187 : i32 to index
    %c0_136 = arith.constant 0 : index
    %210 = vector.load %arg12[%209, %c0_136] : memref<64x32xf32, #tpu.memory_space<vmem>>, vector<8x32xf32>
    tpu.vector_store %arg12[%209, %c0_136], %208 {strides = array<i32>} : memref<64x32xf32, #tpu.memory_space<vmem>>, vector<8x32xf32>,
    %c8_i32_137 = arith.constant 8 : i32
    %c0_138 = arith.constant 0 : index
    %c0_139 = arith.constant 0 : index
    %211 = vector.load %arg12[%c0_138, %c0_139] : memref<64x32xf32, #tpu.memory_space<vmem>>, vector<64x32xf32>
    %c0_140 = arith.constant 0 : index
    %c0_141 = arith.constant 0 : index
    %212 = vector.load %arg5[%c0_140, %c0_141] : memref<32x128xf32, #tpu.memory_space<vmem>>, vector<32x128xf32>
    %cst_142 = arith.constant dense<0.000000e+00> : vector<64x128xf32>
    %213 = tpu.matmul %211, %212, %cst_142 {dimension_numbers = #tpu.dot_dimension_numbers<[1], [0], [0], [1], [0, 0, 1, 1], [], []>} : vector<64x32xf32>, vector<32x128xf32>, vector<64x128xf32> -> vector<64x128xf32>
    %c0_143 = arith.constant 0 : index
    %c0_144 = arith.constant 0 : index
    %214 = vector.load %arg13[%c0_143, %c0_144] : memref<64x128xf32, #tpu.memory_space<vmem>>, vector<64x128xf32>
    tpu.vector_store %arg13[%c0_143, %c0_144], %213 {strides = array<i32>} : memref<64x128xf32, #tpu.memory_space<vmem>>, vector<64x128xf32>,
    %c0_i32_145 = arith.constant 0 : i32
    %c8_i32_146 = arith.constant 8 : i32
    %215 = arith.muli %c0_i32_145, %c8_i32_146 : i32
    %216 = tpu.assume_multiple %215, 8 : i32
    %c0_147 = arith.constant 0 : index
    %c0_148 = arith.constant 0 : index
    %217 = vector.load %arg10[%c0_147, %c0_148] : memref<8x128xf32, #tpu.memory_space<vmem>>, vector<8x128xf32>
    %218 = arith.index_cast %216 : i32 to index
    %c0_149 = arith.constant 0 : index
    %219 = vector.load %arg13[%218, %c0_149] : memref<64x128xf32, #tpu.memory_space<vmem>>, vector<8x128xf32>
    %220 = arith.addf %217, %219 : vector<8x128xf32>
    %c0_150 = arith.constant 0 : index
    %c0_151 = arith.constant 0 : index
    %221 = vector.load %arg9[%c0_150, %c0_151] : memref<8x128xf32, #tpu.memory_space<vmem>>, vector<8x128xf32>
    %c0_152 = arith.constant 0 : index
    %c0_153 = arith.constant 0 : index
    %222 = vector.load %arg9[%c0_152, %c0_153] : memref<8x128xf32, #tpu.memory_space<vmem>>, vector<8x128xf32>
    %cst_154 = arith.constant 0.000000e+00 : f32
    %223 = vector.broadcast %cst_154 : f32 to vector<8x128xf32>
    %224 = arith.subf %223, %222 : vector<8x128xf32>
    %225 = arith.addf %224, %220 : vector<8x128xf32>
    %cst_155 = arith.constant 1.000000e-01 : f32
    %226 = vector.broadcast %cst_155 : f32 to vector<8x128xf32>
    %227 = arith.mulf %226, %225 : vector<8x128xf32>
    %228 = arith.addf %221, %227 : vector<8x128xf32>
    %c0_156 = arith.constant 0 : index
    %c0_157 = arith.constant 0 : index
    %229 = vector.load %arg9[%c0_156, %c0_157] : memref<8x128xf32, #tpu.memory_space<vmem>>, vector<8x128xf32>
    tpu.vector_store %arg9[%c0_156, %c0_157], %228 {strides = array<i32>} : memref<8x128xf32, #tpu.memory_space<vmem>>, vector<8x128xf32>,
    %cst_158 = arith.constant 8.000000e-01 : f32
    %230 = vector.broadcast %cst_158 : f32 to vector<8x128xf32>
    %231 = arith.mulf %220, %230 : vector<8x128xf32>
    %c0_159 = arith.constant 0 : index
    %c0_160 = arith.constant 0 : index
    %232 = vector.load %arg10[%c0_159, %c0_160] : memref<8x128xf32, #tpu.memory_space<vmem>>, vector<8x128xf32>
    tpu.vector_store %arg10[%c0_159, %c0_160], %231 {strides = array<i32>} : memref<8x128xf32, #tpu.memory_space<vmem>>, vector<8x128xf32>,
    %233 = arith.index_cast %c0_i32_145 : i32 to index
    %c0_161 = arith.constant 0 : index
    %c0_162 = arith.constant 0 : index
    %234 = vector.load %arg6[%233, %c0_161, %c0_162] : memref<8x8x128xf32, #tpu.memory_space<vmem>>, vector<1x8x128xf32>
    %235 = vector.shape_cast %234 : vector<1x8x128xf32> to vector<8x128xf32>
    %236 = vector.shape_cast %228 : vector<8x128xf32> to vector<1x8x128xf32>
    tpu.vector_store %arg6[%233, %c0_161, %c0_162], %236 {strides = array<i32>} : memref<8x8x128xf32, #tpu.memory_space<vmem>>, vector<1x8x128xf32>,
    %c1_i32_163 = arith.constant 1 : i32
    %c8_i32_164 = arith.constant 8 : i32
    %237 = arith.muli %c1_i32_163, %c8_i32_164 : i32
    %238 = tpu.assume_multiple %237, 8 : i32
    %c0_165 = arith.constant 0 : index
    %c0_166 = arith.constant 0 : index
    %239 = vector.load %arg10[%c0_165, %c0_166] : memref<8x128xf32, #tpu.memory_space<vmem>>, vector<8x128xf32>
    %240 = arith.index_cast %238 : i32 to index
    %c0_167 = arith.constant 0 : index
    %241 = vector.load %arg13[%240, %c0_167] : memref<64x128xf32, #tpu.memory_space<vmem>>, vector<8x128xf32>
    %242 = arith.addf %239, %241 : vector<8x128xf32>
    %c0_168 = arith.constant 0 : index
    %c0_169 = arith.constant 0 : index
    %243 = vector.load %arg9[%c0_168, %c0_169] : memref<8x128xf32, #tpu.memory_space<vmem>>, vector<8x128xf32>
    %c0_170 = arith.constant 0 : index
    %c0_171 = arith.constant 0 : index
    %244 = vector.load %arg9[%c0_170, %c0_171] : memref<8x128xf32, #tpu.memory_space<vmem>>, vector<8x128xf32>
    %cst_172 = arith.constant 0.000000e+00 : f32
    %245 = vector.broadcast %cst_172 : f32 to vector<8x128xf32>
    %246 = arith.subf %245, %244 : vector<8x128xf32>
    %247 = arith.addf %246, %242 : vector<8x128xf32>
    %cst_173 = arith.constant 1.000000e-01 : f32
    %248 = vector.broadcast %cst_173 : f32 to vector<8x128xf32>
    %249 = arith.mulf %248, %247 : vector<8x128xf32>
    %250 = arith.addf %243, %249 : vector<8x128xf32>
    %c0_174 = arith.constant 0 : index
    %c0_175 = arith.constant 0 : index
    %251 = vector.load %arg9[%c0_174, %c0_175] : memref<8x128xf32, #tpu.memory_space<vmem>>, vector<8x128xf32>
    tpu.vector_store %arg9[%c0_174, %c0_175], %250 {strides = array<i32>} : memref<8x128xf32, #tpu.memory_space<vmem>>, vector<8x128xf32>,
    %cst_176 = arith.constant 8.000000e-01 : f32
    %252 = vector.broadcast %cst_176 : f32 to vector<8x128xf32>
    %253 = arith.mulf %242, %252 : vector<8x128xf32>
    %c0_177 = arith.constant 0 : index
    %c0_178 = arith.constant 0 : index
    %254 = vector.load %arg10[%c0_177, %c0_178] : memref<8x128xf32, #tpu.memory_space<vmem>>, vector<8x128xf32>
    tpu.vector_store %arg10[%c0_177, %c0_178], %253 {strides = array<i32>} : memref<8x128xf32, #tpu.memory_space<vmem>>, vector<8x128xf32>,
    %255 = arith.index_cast %c1_i32_163 : i32 to index
    %c0_179 = arith.constant 0 : index
    %c0_180 = arith.constant 0 : index
    %256 = vector.load %arg6[%255, %c0_179, %c0_180] : memref<8x8x128xf32, #tpu.memory_space<vmem>>, vector<1x8x128xf32>
    %257 = vector.shape_cast %256 : vector<1x8x128xf32> to vector<8x128xf32>
    %258 = vector.shape_cast %250 : vector<8x128xf32> to vector<1x8x128xf32>
    tpu.vector_store %arg6[%255, %c0_179, %c0_180], %258 {strides = array<i32>} : memref<8x8x128xf32, #tpu.memory_space<vmem>>, vector<1x8x128xf32>,
    %c2_i32_181 = arith.constant 2 : i32
    %c8_i32_182 = arith.constant 8 : i32
    %259 = arith.muli %c2_i32_181, %c8_i32_182 : i32
    %260 = tpu.assume_multiple %259, 8 : i32
    %c0_183 = arith.constant 0 : index
    %c0_184 = arith.constant 0 : index
    %261 = vector.load %arg10[%c0_183, %c0_184] : memref<8x128xf32, #tpu.memory_space<vmem>>, vector<8x128xf32>
    %262 = arith.index_cast %260 : i32 to index
    %c0_185 = arith.constant 0 : index
    %263 = vector.load %arg13[%262, %c0_185] : memref<64x128xf32, #tpu.memory_space<vmem>>, vector<8x128xf32>
    %264 = arith.addf %261, %263 : vector<8x128xf32>
    %c0_186 = arith.constant 0 : index
    %c0_187 = arith.constant 0 : index
    %265 = vector.load %arg9[%c0_186, %c0_187] : memref<8x128xf32, #tpu.memory_space<vmem>>, vector<8x128xf32>
    %c0_188 = arith.constant 0 : index
    %c0_189 = arith.constant 0 : index
    %266 = vector.load %arg9[%c0_188, %c0_189] : memref<8x128xf32, #tpu.memory_space<vmem>>, vector<8x128xf32>
    %cst_190 = arith.constant 0.000000e+00 : f32
    %267 = vector.broadcast %cst_190 : f32 to vector<8x128xf32>
    %268 = arith.subf %267, %266 : vector<8x128xf32>
    %269 = arith.addf %268, %264 : vector<8x128xf32>
    %cst_191 = arith.constant 1.000000e-01 : f32
    %270 = vector.broadcast %cst_191 : f32 to vector<8x128xf32>
    %271 = arith.mulf %270, %269 : vector<8x128xf32>
    %272 = arith.addf %265, %271 : vector<8x128xf32>
    %c0_192 = arith.constant 0 : index
    %c0_193 = arith.constant 0 : index
    %273 = vector.load %arg9[%c0_192, %c0_193] : memref<8x128xf32, #tpu.memory_space<vmem>>, vector<8x128xf32>
    tpu.vector_store %arg9[%c0_192, %c0_193], %272 {strides = array<i32>} : memref<8x128xf32, #tpu.memory_space<vmem>>, vector<8x128xf32>,
    %cst_194 = arith.constant 8.000000e-01 : f32
    %274 = vector.broadcast %cst_194 : f32 to vector<8x128xf32>
    %275 = arith.mulf %264, %274 : vector<8x128xf32>
    %c0_195 = arith.constant 0 : index
    %c0_196 = arith.constant 0 : index
    %276 = vector.load %arg10[%c0_195, %c0_196] : memref<8x128xf32, #tpu.memory_space<vmem>>, vector<8x128xf32>
    tpu.vector_store %arg10[%c0_195, %c0_196], %275 {strides = array<i32>} : memref<8x128xf32, #tpu.memory_space<vmem>>, vector<8x128xf32>,
    %277 = arith.index_cast %c2_i32_181 : i32 to index
    %c0_197 = arith.constant 0 : index
    %c0_198 = arith.constant 0 : index
    %278 = vector.load %arg6[%277, %c0_197, %c0_198] : memref<8x8x128xf32, #tpu.memory_space<vmem>>, vector<1x8x128xf32>
    %279 = vector.shape_cast %278 : vector<1x8x128xf32> to vector<8x128xf32>
    %280 = vector.shape_cast %272 : vector<8x128xf32> to vector<1x8x128xf32>
    tpu.vector_store %arg6[%277, %c0_197, %c0_198], %280 {strides = array<i32>} : memref<8x8x128xf32, #tpu.memory_space<vmem>>, vector<1x8x128xf32>,
    %c3_i32_199 = arith.constant 3 : i32
    %c8_i32_200 = arith.constant 8 : i32
    %281 = arith.muli %c3_i32_199, %c8_i32_200 : i32
    %282 = tpu.assume_multiple %281, 8 : i32
    %c0_201 = arith.constant 0 : index
    %c0_202 = arith.constant 0 : index
    %283 = vector.load %arg10[%c0_201, %c0_202] : memref<8x128xf32, #tpu.memory_space<vmem>>, vector<8x128xf32>
    %284 = arith.index_cast %282 : i32 to index
    %c0_203 = arith.constant 0 : index
    %285 = vector.load %arg13[%284, %c0_203] : memref<64x128xf32, #tpu.memory_space<vmem>>, vector<8x128xf32>
    %286 = arith.addf %283, %285 : vector<8x128xf32>
    %c0_204 = arith.constant 0 : index
    %c0_205 = arith.constant 0 : index
    %287 = vector.load %arg9[%c0_204, %c0_205] : memref<8x128xf32, #tpu.memory_space<vmem>>, vector<8x128xf32>
    %c0_206 = arith.constant 0 : index
    %c0_207 = arith.constant 0 : index
    %288 = vector.load %arg9[%c0_206, %c0_207] : memref<8x128xf32, #tpu.memory_space<vmem>>, vector<8x128xf32>
    %cst_208 = arith.constant 0.000000e+00 : f32
    %289 = vector.broadcast %cst_208 : f32 to vector<8x128xf32>
    %290 = arith.subf %289, %288 : vector<8x128xf32>
    %291 = arith.addf %290, %286 : vector<8x128xf32>
    %cst_209 = arith.constant 1.000000e-01 : f32
    %292 = vector.broadcast %cst_209 : f32 to vector<8x128xf32>
    %293 = arith.mulf %292, %291 : vector<8x128xf32>
    %294 = arith.addf %287, %293 : vector<8x128xf32>
    %c0_210 = arith.constant 0 : index
    %c0_211 = arith.constant 0 : index
    %295 = vector.load %arg9[%c0_210, %c0_211] : memref<8x128xf32, #tpu.memory_space<vmem>>, vector<8x128xf32>
    tpu.vector_store %arg9[%c0_210, %c0_211], %294 {strides = array<i32>} : memref<8x128xf32, #tpu.memory_space<vmem>>, vector<8x128xf32>,
    %cst_212 = arith.constant 8.000000e-01 : f32
    %296 = vector.broadcast %cst_212 : f32 to vector<8x128xf32>
    %297 = arith.mulf %286, %296 : vector<8x128xf32>
    %c0_213 = arith.constant 0 : index
    %c0_214 = arith.constant 0 : index
    %298 = vector.load %arg10[%c0_213, %c0_214] : memref<8x128xf32, #tpu.memory_space<vmem>>, vector<8x128xf32>
    tpu.vector_store %arg10[%c0_213, %c0_214], %297 {strides = array<i32>} : memref<8x128xf32, #tpu.memory_space<vmem>>, vector<8x128xf32>,
    %299 = arith.index_cast %c3_i32_199 : i32 to index
    %c0_215 = arith.constant 0 : index
    %c0_216 = arith.constant 0 : index
    %300 = vector.load %arg6[%299, %c0_215, %c0_216] : memref<8x8x128xf32, #tpu.memory_space<vmem>>, vector<1x8x128xf32>
    %301 = vector.shape_cast %300 : vector<1x8x128xf32> to vector<8x128xf32>
    %302 = vector.shape_cast %294 : vector<8x128xf32> to vector<1x8x128xf32>
    tpu.vector_store %arg6[%299, %c0_215, %c0_216], %302 {strides = array<i32>} : memref<8x8x128xf32, #tpu.memory_space<vmem>>, vector<1x8x128xf32>,
    %c4_i32_217 = arith.constant 4 : i32
    %c8_i32_218 = arith.constant 8 : i32
    %303 = arith.muli %c4_i32_217, %c8_i32_218 : i32
    %304 = tpu.assume_multiple %303, 8 : i32
    %c0_219 = arith.constant 0 : index
    %c0_220 = arith.constant 0 : index
    %305 = vector.load %arg10[%c0_219, %c0_220] : memref<8x128xf32, #tpu.memory_space<vmem>>, vector<8x128xf32>
    %306 = arith.index_cast %304 : i32 to index
    %c0_221 = arith.constant 0 : index
    %307 = vector.load %arg13[%306, %c0_221] : memref<64x128xf32, #tpu.memory_space<vmem>>, vector<8x128xf32>
    %308 = arith.addf %305, %307 : vector<8x128xf32>
    %c0_222 = arith.constant 0 : index
    %c0_223 = arith.constant 0 : index
    %309 = vector.load %arg9[%c0_222, %c0_223] : memref<8x128xf32, #tpu.memory_space<vmem>>, vector<8x128xf32>
    %c0_224 = arith.constant 0 : index
    %c0_225 = arith.constant 0 : index
    %310 = vector.load %arg9[%c0_224, %c0_225] : memref<8x128xf32, #tpu.memory_space<vmem>>, vector<8x128xf32>
    %cst_226 = arith.constant 0.000000e+00 : f32
    %311 = vector.broadcast %cst_226 : f32 to vector<8x128xf32>
    %312 = arith.subf %311, %310 : vector<8x128xf32>
    %313 = arith.addf %312, %308 : vector<8x128xf32>
    %cst_227 = arith.constant 1.000000e-01 : f32
    %314 = vector.broadcast %cst_227 : f32 to vector<8x128xf32>
    %315 = arith.mulf %314, %313 : vector<8x128xf32>
    %316 = arith.addf %309, %315 : vector<8x128xf32>
    %c0_228 = arith.constant 0 : index
    %c0_229 = arith.constant 0 : index
    %317 = vector.load %arg9[%c0_228, %c0_229] : memref<8x128xf32, #tpu.memory_space<vmem>>, vector<8x128xf32>
    tpu.vector_store %arg9[%c0_228, %c0_229], %316 {strides = array<i32>} : memref<8x128xf32, #tpu.memory_space<vmem>>, vector<8x128xf32>,
    %cst_230 = arith.constant 8.000000e-01 : f32
    %318 = vector.broadcast %cst_230 : f32 to vector<8x128xf32>
    %319 = arith.mulf %308, %318 : vector<8x128xf32>
    %c0_231 = arith.constant 0 : index
    %c0_232 = arith.constant 0 : index
    %320 = vector.load %arg10[%c0_231, %c0_232] : memref<8x128xf32, #tpu.memory_space<vmem>>, vector<8x128xf32>
    tpu.vector_store %arg10[%c0_231, %c0_232], %319 {strides = array<i32>} : memref<8x128xf32, #tpu.memory_space<vmem>>, vector<8x128xf32>,
    %321 = arith.index_cast %c4_i32_217 : i32 to index
    %c0_233 = arith.constant 0 : index
    %c0_234 = arith.constant 0 : index
    %322 = vector.load %arg6[%321, %c0_233, %c0_234] : memref<8x8x128xf32, #tpu.memory_space<vmem>>, vector<1x8x128xf32>
    %323 = vector.shape_cast %322 : vector<1x8x128xf32> to vector<8x128xf32>
    %324 = vector.shape_cast %316 : vector<8x128xf32> to vector<1x8x128xf32>
    tpu.vector_store %arg6[%321, %c0_233, %c0_234], %324 {strides = array<i32>} : memref<8x8x128xf32, #tpu.memory_space<vmem>>, vector<1x8x128xf32>,
    %c5_i32_235 = arith.constant 5 : i32
    %c8_i32_236 = arith.constant 8 : i32
    %325 = arith.muli %c5_i32_235, %c8_i32_236 : i32
    %326 = tpu.assume_multiple %325, 8 : i32
    %c0_237 = arith.constant 0 : index
    %c0_238 = arith.constant 0 : index
    %327 = vector.load %arg10[%c0_237, %c0_238] : memref<8x128xf32, #tpu.memory_space<vmem>>, vector<8x128xf32>
    %328 = arith.index_cast %326 : i32 to index
    %c0_239 = arith.constant 0 : index
    %329 = vector.load %arg13[%328, %c0_239] : memref<64x128xf32, #tpu.memory_space<vmem>>, vector<8x128xf32>
    %330 = arith.addf %327, %329 : vector<8x128xf32>
    %c0_240 = arith.constant 0 : index
    %c0_241 = arith.constant 0 : index
    %331 = vector.load %arg9[%c0_240, %c0_241] : memref<8x128xf32, #tpu.memory_space<vmem>>, vector<8x128xf32>
    %c0_242 = arith.constant 0 : index
    %c0_243 = arith.constant 0 : index
    %332 = vector.load %arg9[%c0_242, %c0_243] : memref<8x128xf32, #tpu.memory_space<vmem>>, vector<8x128xf32>
    %cst_244 = arith.constant 0.000000e+00 : f32
    %333 = vector.broadcast %cst_244 : f32 to vector<8x128xf32>
    %334 = arith.subf %333, %332 : vector<8x128xf32>
    %335 = arith.addf %334, %330 : vector<8x128xf32>
    %cst_245 = arith.constant 1.000000e-01 : f32
    %336 = vector.broadcast %cst_245 : f32 to vector<8x128xf32>
    %337 = arith.mulf %336, %335 : vector<8x128xf32>
    %338 = arith.addf %331, %337 : vector<8x128xf32>
    %c0_246 = arith.constant 0 : index
    %c0_247 = arith.constant 0 : index
    %339 = vector.load %arg9[%c0_246, %c0_247] : memref<8x128xf32, #tpu.memory_space<vmem>>, vector<8x128xf32>
    tpu.vector_store %arg9[%c0_246, %c0_247], %338 {strides = array<i32>} : memref<8x128xf32, #tpu.memory_space<vmem>>, vector<8x128xf32>,
    %cst_248 = arith.constant 8.000000e-01 : f32
    %340 = vector.broadcast %cst_248 : f32 to vector<8x128xf32>
    %341 = arith.mulf %330, %340 : vector<8x128xf32>
    %c0_249 = arith.constant 0 : index
    %c0_250 = arith.constant 0 : index
    %342 = vector.load %arg10[%c0_249, %c0_250] : memref<8x128xf32, #tpu.memory_space<vmem>>, vector<8x128xf32>
    tpu.vector_store %arg10[%c0_249, %c0_250], %341 {strides = array<i32>} : memref<8x128xf32, #tpu.memory_space<vmem>>, vector<8x128xf32>,
    %343 = arith.index_cast %c5_i32_235 : i32 to index
    %c0_251 = arith.constant 0 : index
    %c0_252 = arith.constant 0 : index
    %344 = vector.load %arg6[%343, %c0_251, %c0_252] : memref<8x8x128xf32, #tpu.memory_space<vmem>>, vector<1x8x128xf32>
    %345 = vector.shape_cast %344 : vector<1x8x128xf32> to vector<8x128xf32>
    %346 = vector.shape_cast %338 : vector<8x128xf32> to vector<1x8x128xf32>
    tpu.vector_store %arg6[%343, %c0_251, %c0_252], %346 {strides = array<i32>} : memref<8x8x128xf32, #tpu.memory_space<vmem>>, vector<1x8x128xf32>,
    %c6_i32_253 = arith.constant 6 : i32
    %c8_i32_254 = arith.constant 8 : i32
    %347 = arith.muli %c6_i32_253, %c8_i32_254 : i32
    %348 = tpu.assume_multiple %347, 8 : i32
    %c0_255 = arith.constant 0 : index
    %c0_256 = arith.constant 0 : index
    %349 = vector.load %arg10[%c0_255, %c0_256] : memref<8x128xf32, #tpu.memory_space<vmem>>, vector<8x128xf32>
    %350 = arith.index_cast %348 : i32 to index
    %c0_257 = arith.constant 0 : index
    %351 = vector.load %arg13[%350, %c0_257] : memref<64x128xf32, #tpu.memory_space<vmem>>, vector<8x128xf32>
    %352 = arith.addf %349, %351 : vector<8x128xf32>
    %c0_258 = arith.constant 0 : index
    %c0_259 = arith.constant 0 : index
    %353 = vector.load %arg9[%c0_258, %c0_259] : memref<8x128xf32, #tpu.memory_space<vmem>>, vector<8x128xf32>
    %c0_260 = arith.constant 0 : index
    %c0_261 = arith.constant 0 : index
    %354 = vector.load %arg9[%c0_260, %c0_261] : memref<8x128xf32, #tpu.memory_space<vmem>>, vector<8x128xf32>
    %cst_262 = arith.constant 0.000000e+00 : f32
    %355 = vector.broadcast %cst_262 : f32 to vector<8x128xf32>
    %356 = arith.subf %355, %354 : vector<8x128xf32>
    %357 = arith.addf %356, %352 : vector<8x128xf32>
    %cst_263 = arith.constant 1.000000e-01 : f32
    %358 = vector.broadcast %cst_263 : f32 to vector<8x128xf32>
    %359 = arith.mulf %358, %357 : vector<8x128xf32>
    %360 = arith.addf %353, %359 : vector<8x128xf32>
    %c0_264 = arith.constant 0 : index
    %c0_265 = arith.constant 0 : index
    %361 = vector.load %arg9[%c0_264, %c0_265] : memref<8x128xf32, #tpu.memory_space<vmem>>, vector<8x128xf32>
    tpu.vector_store %arg9[%c0_264, %c0_265], %360 {strides = array<i32>} : memref<8x128xf32, #tpu.memory_space<vmem>>, vector<8x128xf32>,
    %cst_266 = arith.constant 8.000000e-01 : f32
    %362 = vector.broadcast %cst_266 : f32 to vector<8x128xf32>
    %363 = arith.mulf %352, %362 : vector<8x128xf32>
    %c0_267 = arith.constant 0 : index
    %c0_268 = arith.constant 0 : index
    %364 = vector.load %arg10[%c0_267, %c0_268] : memref<8x128xf32, #tpu.memory_space<vmem>>, vector<8x128xf32>
    tpu.vector_store %arg10[%c0_267, %c0_268], %363 {strides = array<i32>} : memref<8x128xf32, #tpu.memory_space<vmem>>, vector<8x128xf32>,
    %365 = arith.index_cast %c6_i32_253 : i32 to index
    %c0_269 = arith.constant 0 : index
    %c0_270 = arith.constant 0 : index
    %366 = vector.load %arg6[%365, %c0_269, %c0_270] : memref<8x8x128xf32, #tpu.memory_space<vmem>>, vector<1x8x128xf32>
    %367 = vector.shape_cast %366 : vector<1x8x128xf32> to vector<8x128xf32>
    %368 = vector.shape_cast %360 : vector<8x128xf32> to vector<1x8x128xf32>
    tpu.vector_store %arg6[%365, %c0_269, %c0_270], %368 {strides = array<i32>} : memref<8x8x128xf32, #tpu.memory_space<vmem>>, vector<1x8x128xf32>,
    %c7_i32_271 = arith.constant 7 : i32
    %c8_i32_272 = arith.constant 8 : i32
    %369 = arith.muli %c7_i32_271, %c8_i32_272 : i32
    %370 = tpu.assume_multiple %369, 8 : i32
    %c0_273 = arith.constant 0 : index
    %c0_274 = arith.constant 0 : index
    %371 = vector.load %arg10[%c0_273, %c0_274] : memref<8x128xf32, #tpu.memory_space<vmem>>, vector<8x128xf32>
    %372 = arith.index_cast %370 : i32 to index
    %c0_275 = arith.constant 0 : index
    %373 = vector.load %arg13[%372, %c0_275] : memref<64x128xf32, #tpu.memory_space<vmem>>, vector<8x128xf32>
    %374 = arith.addf %371, %373 : vector<8x128xf32>
    %c0_276 = arith.constant 0 : index
    %c0_277 = arith.constant 0 : index
    %375 = vector.load %arg9[%c0_276, %c0_277] : memref<8x128xf32, #tpu.memory_space<vmem>>, vector<8x128xf32>
    %c0_278 = arith.constant 0 : index
    %c0_279 = arith.constant 0 : index
    %376 = vector.load %arg9[%c0_278, %c0_279] : memref<8x128xf32, #tpu.memory_space<vmem>>, vector<8x128xf32>
    %cst_280 = arith.constant 0.000000e+00 : f32
    %377 = vector.broadcast %cst_280 : f32 to vector<8x128xf32>
    %378 = arith.subf %377, %376 : vector<8x128xf32>
    %379 = arith.addf %378, %374 : vector<8x128xf32>
    %cst_281 = arith.constant 1.000000e-01 : f32
    %380 = vector.broadcast %cst_281 : f32 to vector<8x128xf32>
    %381 = arith.mulf %380, %379 : vector<8x128xf32>
    %382 = arith.addf %375, %381 : vector<8x128xf32>
    %c0_282 = arith.constant 0 : index
    %c0_283 = arith.constant 0 : index
    %383 = vector.load %arg9[%c0_282, %c0_283] : memref<8x128xf32, #tpu.memory_space<vmem>>, vector<8x128xf32>
    tpu.vector_store %arg9[%c0_282, %c0_283], %382 {strides = array<i32>} : memref<8x128xf32, #tpu.memory_space<vmem>>, vector<8x128xf32>,
    %cst_284 = arith.constant 8.000000e-01 : f32
    %384 = vector.broadcast %cst_284 : f32 to vector<8x128xf32>
    %385 = arith.mulf %374, %384 : vector<8x128xf32>
    %c0_285 = arith.constant 0 : index
    %c0_286 = arith.constant 0 : index
    %386 = vector.load %arg10[%c0_285, %c0_286] : memref<8x128xf32, #tpu.memory_space<vmem>>, vector<8x128xf32>
    tpu.vector_store %arg10[%c0_285, %c0_286], %385 {strides = array<i32>} : memref<8x128xf32, #tpu.memory_space<vmem>>, vector<8x128xf32>,
    %387 = arith.index_cast %c7_i32_271 : i32 to index
    %c0_287 = arith.constant 0 : index
    %c0_288 = arith.constant 0 : index
    %388 = vector.load %arg6[%387, %c0_287, %c0_288] : memref<8x8x128xf32, #tpu.memory_space<vmem>>, vector<1x8x128xf32>
    %389 = vector.shape_cast %388 : vector<1x8x128xf32> to vector<8x128xf32>
    %390 = vector.shape_cast %382 : vector<8x128xf32> to vector<1x8x128xf32>
    tpu.vector_store %arg6[%387, %c0_287, %c0_288], %390 {strides = array<i32>} : memref<8x8x128xf32, #tpu.memory_space<vmem>>, vector<1x8x128xf32>,
    %c8_i32_289 = arith.constant 8 : i32
    return
  }
  func.func @transform_0(%arg0: i32, %arg1: i32) -> (i32, i32, i32) {
    %c0_i32 = arith.constant 0 : i32
    %c0_i32_0 = arith.constant 0 : i32
    return %arg1, %arg0, %c0_i32 : i32, i32, i32
  }
  func.func @transform_1(%arg0: i32, %arg1: i32) -> (i32, i32) {
    %c0_i32 = arith.constant 0 : i32
    %c0_i32_0 = arith.constant 0 : i32
    %c0_i32_1 = arith.constant 0 : i32
    return %c0_i32, %c0_i32_0 : i32, i32
  }
  func.func @transform_2(%arg0: i32, %arg1: i32) -> (i32, i32) {
    %c0_i32 = arith.constant 0 : i32
    %c0_i32_0 = arith.constant 0 : i32
    %c0_i32_1 = arith.constant 0 : i32
    return %c0_i32, %c0_i32_0 : i32, i32
  }
  func.func @transform_3(%arg0: i32, %arg1: i32) -> (i32, i32) {
    %c0_i32 = arith.constant 0 : i32
    %c0_i32_0 = arith.constant 0 : i32
    %c0_i32_1 = arith.constant 0 : i32
    return %c0_i32, %c0_i32_0 : i32, i32
  }
  func.func @transform_4(%arg0: i32, %arg1: i32) -> (i32, i32, i32) {
    %c0_i32 = arith.constant 0 : i32
    %c0_i32_0 = arith.constant 0 : i32
    return %arg1, %arg0, %c0_i32 : i32, i32, i32
  }
}

</mosaic_0001>

<bundles_post_ra>
// kernel: tpu_custom_call.1
= control target key start
LH: loop header
LB: loop body
LE: loop exit
PB: predicated region body
PF: predicated region fallthrough
CT: control target
= control target key end

     0   :  { %s1828_s0 = inlined_call_operand.vmem [shape: f32[8,8,768], index: 0, kind: input, shape index: {}]   ;;  %s1829_s1 = inlined_call_operand.vmem [shape: f32[768,32], index: 1, kind: input, shape index: {}]   ;;  %s1830_s2 = inlined_call_operand.vmem [shape: f32[1,32], index: 2, kind: input, shape index: {}]   ;;  %s1831_s3 = inlined_call_operand.vmem [shape: f32[32,128], index: 3, kind: input, shape index: {}]   ;;  %s1832_s4 = inlined_call_operand.hbm [shape: f32[8,8,128], index: 4, kind: output, shape index: {}]  }
   0x1   :  { %v91_v0 = vld [vmem:[%s1829_s1 + $0x80] sm:$0xff]  ;;  %v92_v1 = vld [vmem:[%s1829_s1 + $0x88] sm:$0xff]  ;;  %v93_v11 = vld [vmem:[%s1829_s1 + $0x90] sm:$0xff] }
   0x2   :  { %v123_v2 = vld [vmem:[%s1829_s1 + $0x180] sm:$0xff]  ;;  %v1136_v3 = vpack.c.bf16 %v92_v1, %v91_v0  ;;  %v124_v4 = vld [vmem:[%s1829_s1 + $0x188] sm:$0xff]  ;;  %v94_v13 = vld [vmem:[%s1829_s1 + $0x98] sm:$0xff] }
   0x3   :  { %v75_v5 = vld [vmem:[%s1829_s1] sm:$0xff]  ;;  %v76_v6 = vld [vmem:[%s1829_s1 + $0x8] sm:$0xff]  ;;  %v1168_v7 = vpack.c.bf16 %v124_v4, %v123_v2  ;;  %v125_v14 = vld [vmem:[%s1829_s1 + $0x190] sm:$0xff]  ;;  %v1140_v16 = vpack.c.bf16 %v94_v13, %v93_v11 }
   0x4   :  { %v1138_v8 = vpack.c.bf16 %v76_v6, %v75_v5  ;;  %v107_v9 = vld [vmem:[%s1829_s1 + $0x100] sm:$0xff]  ;;  %v108_v10 = vld [vmem:[%s1829_s1 + $0x108] sm:$0xff]  ;;  %1137 = vmatprep.subr.bf16.mxu0 %v1136_v3  ;;  %v126_v15 = vld [vmem:[%s1829_s1 + $0x198] sm:$0xff] }
   0x5   :  { %v1170_v12 = vpack.c.bf16 %v108_v10, %v107_v9  ;;  %1169 = vmatprep.subr.bf16.mxu1 %v1168_v7  ;;  %v1172_v17 = vpack.c.bf16 %v126_v15, %v125_v14  ;;  %v77_v18 = vld [vmem:[%s1829_s1 + $0x10] sm:$0xff]  ;;  %v78_v19 = vld [vmem:[%s1829_s1 + $0x18] sm:$0xff]  ;;  %v95_v23 = vld [vmem:[%s1829_s1 + $0xa0] sm:$0xff] }
   0x6   :  { %1139 = vmatpush3.bf16.msra.mxu0 %v1138_v8  ;;  %v109_v20 = vld [vmem:[%s1829_s1 + $0x110] sm:$0xff]  ;;  %v1142_v21 = vpack.c.bf16 %v78_v19, %v77_v18  ;;  %v110_v22 = vld [vmem:[%s1829_s1 + $0x118] sm:$0xff]  ;;  %v96_v24 = vld [vmem:[%s1829_s1 + $0xa8] sm:$0xff] }
   0x7   :  { %1171 = vmatpush3.bf16.msra.mxu1 %v1170_v12  ;;  %1141 = vmatprep.subr.bf16.mxu0 %v1140_v16  ;;  %v1174_v25 = vpack.c.bf16 %v110_v22, %v109_v20  ;;  %v1144_v26 = vpack.c.bf16 %v96_v24, %v95_v23  ;;  %v127_v27 = vld [vmem:[%s1829_s1 + $0x1a0] sm:$0xff]  ;;  %v128_v28 = vld [vmem:[%s1829_s1 + $0x1a8] sm:$0xff]  ;;  %v97_v35 = vld [vmem:[%s1829_s1 + $0xb0] sm:$0xff] }
   0x8   :  { %1173 = vmatprep.subr.bf16.mxu1 %v1172_v17  ;;  %v79_v29 = vld [vmem:[%s1829_s1 + $0x20] sm:$0xff]  ;;  %v1176_v30 = vpack.c.bf16 %v128_v28, %v127_v27  ;;  %v80_v31 = vld [vmem:[%s1829_s1 + $0x28] sm:$0xff]  ;;  %v98_v36 = vld [vmem:[%s1829_s1 + $0xb8] sm:$0xff] }
   0x9   :  { %v111_v32 = vld [vmem:[%s1829_s1 + $0x120] sm:$0xff]  ;;  %v112_v33 = vld [vmem:[%s1829_s1 + $0x128] sm:$0xff]  ;;  %v1146_v34 = vpack.c.bf16 %v80_v31, %v79_v29  ;;  %v129_v37 = vld [vmem:[%s1829_s1 + $0x1b0] sm:$0xff]  ;;  %v1148_v39 = vpack.c.bf16 %v98_v36, %v97_v35 }
   0xa   :  { %1143 = vmatpush3.bf16.msra.mxu0 %v1142_v21  ;;  %v1178_v38 = vpack.c.bf16 %v112_v33, %v111_v32  ;;  %v130_v40 = vld [vmem:[%s1829_s1 + $0x1b8] sm:$0xff]  ;;  %v81_v41 = vld [vmem:[%s1829_s1 + $0x30] sm:$0xff]  ;;  %v99_v46 = vld [vmem:[%s1829_s1 + $0xc0] sm:$0xff] }
   0xb   :  { %1175 = vmatpush3.bf16.msra.mxu1 %v1174_v25  ;;  %1145 = vmatprep.subr.bf16.mxu0 %v1144_v26  ;;  %v82_v42 = vld [vmem:[%s1829_s1 + $0x38] sm:$0xff]  ;;  %v1180_v43 = vpack.c.bf16 %v130_v40, %v129_v37  ;;  %v113_v44 = vld [vmem:[%s1829_s1 + $0x130] sm:$0xff]  ;;  %v100_v47 = vld [vmem:[%s1829_s1 + $0xc8] sm:$0xff] }
   0xc   :  { %1177 = vmatprep.subr.bf16.mxu1 %v1176_v30  ;;  %v114_v45 = vld [vmem:[%s1829_s1 + $0x138] sm:$0xff]  ;;  %v131_v48 = vld [vmem:[%s1829_s1 + $0x1c0] sm:$0xff]  ;;  %v132_v49 = vld [vmem:[%s1829_s1 + $0x1c8] sm:$0xff]  ;;  %v1150_v50 = vpack.c.bf16 %v82_v42, %v81_v41  ;;  %v1152_v52 = vpack.c.bf16 %v100_v47, %v99_v46 }
   0xd   :  { %v1182_v51 = vpack.c.bf16 %v114_v45, %v113_v44  ;;  %v83_v53 = vld [vmem:[%s1829_s1 + $0x40] sm:$0xff]  ;;  %v84_v54 = vld [vmem:[%s1829_s1 + $0x48] sm:$0xff]  ;;  %v1184_v56 = vpack.c.bf16 %v132_v49, %v131_v48  ;;  %v101_v58 = vld [vmem:[%s1829_s1 + $0xd0] sm:$0xff] }
   0xe   :  { %1147 = vmatpush3.bf16.msra.mxu0 %v1146_v34  ;;  %v115_v55 = vld [vmem:[%s1829_s1 + $0x140] sm:$0xff]  ;;  %v116_v57 = vld [vmem:[%s1829_s1 + $0x148] sm:$0xff]  ;;  %v102_v59 = vld [vmem:[%s1829_s1 + $0xd8] sm:$0xff]  ;;  %v1154_v62 = vpack.c.bf16 %v84_v54, %v83_v53 }
   0xf   :  { %1179 = vmatpush3.bf16.msra.mxu1 %v1178_v38  ;;  %1149 = vmatprep.subr.bf16.mxu0 %v1148_v39  ;;  %v133_v60 = vld [vmem:[%s1829_s1 + $0x1d0] sm:$0xff]  ;;  %v134_v61 = vld [vmem:[%s1829_s1 + $0x1d8] sm:$0xff]  ;;  %v1186_v63 = vpack.c.bf16 %v116_v57, %v115_v55  ;;  %v1156_v0 = vpack.c.bf16 %v102_v59, %v101_v58  ;;  %v103_v6 = vld [vmem:[%s1829_s1 + $0xe0] sm:$0xff] }
  0x10   :  { %1181 = vmatprep.subr.bf16.mxu1 %v1180_v43  ;;  %v85_v1 = vld [vmem:[%s1829_s1 + $0x50] sm:$0xff]  ;;  %v86_v2 = vld [vmem:[%s1829_s1 + $0x58] sm:$0xff]  ;;  %v1188_v4 = vpack.c.bf16 %v134_v61, %v133_v60  ;;  %v104_v7 = vld [vmem:[%s1829_s1 + $0xe8] sm:$0xff] }
  0x11   :  { %v117_v3 = vld [vmem:[%s1829_s1 + $0x150] sm:$0xff]  ;;  %v118_v5 = vld [vmem:[%s1829_s1 + $0x158] sm:$0xff]  ;;  %v135_v8 = vld [vmem:[%s1829_s1 + $0x1e0] sm:$0xff]  ;;  %v1158_v10 = vpack.c.bf16 %v86_v2, %v85_v1  ;;  %v1160_v14 = vpack.c.bf16 %v104_v7, %v103_v6 }
  0x12   :  { %1151 = vmatpush3.bf16.msra.mxu0 %v1150_v50  ;;  %v136_v9 = vld [vmem:[%s1829_s1 + $0x1e8] sm:$0xff]  ;;  %v87_v11 = vld [vmem:[%s1829_s1 + $0x60] sm:$0xff]  ;;  %v1190_v13 = vpack.c.bf16 %v118_v5, %v117_v3  ;;  %v30_v17 = vld [vmem:[%s1828_s0 + $0x18] sm:$0xff] }
  0x13   :  { %1183 = vmatpush3.bf16.msra.mxu1 %v1182_v51  ;;  %1153 = vmatprep.subr.bf16.mxu0 %v1152_v52  ;;  %v88_v12 = vld [vmem:[%s1829_s1 + $0x68] sm:$0xff]  ;;  %v119_v15 = vld [vmem:[%s1829_s1 + $0x160] sm:$0xff]  ;;  %v1192_v18 = vpack.c.bf16 %v136_v9, %v135_v8  ;;  %v105_v20 = vld [vmem:[%s1829_s1 + $0xf0] sm:$0xff] }
  0x14   :  { %1185 = vmatprep.subr.bf16.mxu1 %v1184_v56  ;;  %v28_v16 = vld [vmem:[%s1828_s0 + $0x8] sm:$0xff]  ;;  %v106_v21 = vld [vmem:[%s1829_s1 + $0xf8] sm:$0xff]  ;;  %v137_v22 = vld [vmem:[%s1829_s1 + $0x1f0] sm:$0xff]  ;;  %347 = vmatprep.mubr.f32.mxu1 %v30_v17  ;;  %v1162_v24 = vpack.c.bf16 %v88_v12, %v87_v11 }
  0x15   :  { %v120_v19 = vld [vmem:[%s1829_s1 + $0x168] sm:$0xff]  ;;  %242 = vmatprep.mubr.f32.mxu0 %v28_v16  ;;  %v138_v23 = vld [vmem:[%s1829_s1 + $0x1f8] sm:$0xff]  ;;  %v1164_v26 = vpack.c.bf16 %v106_v21, %v105_v20  ;;  %v89_v27 = vld [vmem:[%s1829_s1 + $0x70] sm:$0xff] }
  0x16   :  { %1155 = vmatpush3.bf16.msra.mxu0 %v1154_v62  ;;  %v1194_v25 = vpack.c.bf16 %v120_v19, %v119_v15  ;;  %v90_v28 = vld [vmem:[%s1829_s1 + $0x78] sm:$0xff]  ;;  %v121_v29 = vld [vmem:[%s1829_s1 + $0x170] sm:$0xff]  ;;  %v1196_v30 = vpack.c.bf16 %v138_v23, %v137_v22  ;;  %v155_v32 = vld [vmem:[%s1829_s1 + $0x280] sm:$0xff] }
  0x17   :  { %1187 = vmatpush3.bf16.msra.mxu1 %v1186_v63  ;;  %1157 = vmatprep.subr.bf16.mxu0 %v1156_v0  ;;  %v122_v31 = vld [vmem:[%s1829_s1 + $0x178] sm:$0xff]  ;;  %v156_v33 = vld [vmem:[%s1829_s1 + $0x288] sm:$0xff]  ;;  %v1166_v34 = vpack.c.bf16 %v90_v28, %v89_v27  ;;  %v139_v37 = vld [vmem:[%s1829_s1 + $0x200] sm:$0xff] }
  0x18   :  { %1189 = vmatprep.subr.bf16.mxu1 %v1188_v4  ;;  %v1198_v35 = vpack.c.bf16 %v122_v31, %v121_v29  ;;  %v1200_v36 = vpack.c.bf16 %v156_v33, %v155_v32  ;;  %v140_v38 = vld [vmem:[%s1829_s1 + $0x208] sm:$0xff]  ;;  %v157_v39 = vld [vmem:[%s1829_s1 + $0x290] sm:$0xff]  ;;  %v158_v40 = vld [vmem:[%s1829_s1 + $0x298] sm:$0xff] }
  0x19   :  { %v27_v41 = vld [vmem:[%s1828_s0] sm:$0xff]  ;;  %v1202_v42 = vpack.c.bf16 %v140_v38, %v139_v37  ;;  %v29_v43 = vld [vmem:[%s1828_s0 + $0x10] sm:$0xff]  ;;  %v142_v45 = vld [vmem:[%s1829_s1 + $0x218] sm:$0xff]  ;;  %v1204_v47 = vpack.c.bf16 %v158_v40, %v157_v39 }
  0x1a   :  { %1159 = vmatpush3.bf16.msra.mxu0 %v1158_v10  ;;  %v141_v44 = vld [vmem:[%s1829_s1 + $0x210] sm:$0xff]  ;;  %v34_v46 = vld [vmem:[%s1828_s0 + $0x38] sm:$0xff]  ;;  %v36_v48 = vld [vmem:[%s1828_s0 + $0x48] sm:$0xff] }
  0x1b   :  { %1191 = vmatpush3.bf16.msra.mxu1 %v1190_v13  ;;  %1161 = vmatprep.subr.bf16.mxu0 %v1160_v14  ;;  %v159_v49 = vld [vmem:[%s1829_s1 + $0x2a0] sm:$0xff]  ;;  %v160_v50 = vld [vmem:[%s1829_s1 + $0x2a8] sm:$0xff]  ;;  %v33_v51 = vld [vmem:[%s1828_s0 + $0x30] sm:$0xff]  ;;  %v1206_v52 = vpack.c.bf16 %v142_v45, %v141_v44 }
  0x1c   :  { %1193 = vmatprep.subr.bf16.mxu1 %v1192_v18  ;;  %v35_v53 = vld [vmem:[%s1828_s0 + $0x40] sm:$0xff]  ;;  %v144_v55 = vld [vmem:[%s1829_s1 + $0x228] sm:$0xff]  ;;  %v1208_v57 = vpack.c.bf16 %v160_v50, %v159_v49  ;;  %v42_v58 = vld [vmem:[%s1828_s0 + $0x78] sm:$0xff] }
  0x1d   :  { %v143_v54 = vld [vmem:[%s1829_s1 + $0x220] sm:$0xff]  ;;  %v40_v56 = vld [vmem:[%s1828_s0 + $0x68] sm:$0xff]  ;;  %v161_v59 = vld [vmem:[%s1829_s1 + $0x2b0] sm:$0xff] }
  0x1e   :  { %1163 = vmatpush3.bf16.msra.mxu0 %v1162_v24  ;;  %v162_v60 = vld [vmem:[%s1829_s1 + $0x2b8] sm:$0xff]  ;;  %v39_v61 = vld [vmem:[%s1828_s0 + $0x60] sm:$0xff]  ;;  %v1210_v62 = vpack.c.bf16 %v144_v55, %v143_v54  ;;  %v41_v63 = vld [vmem:[%s1828_s0 + $0x70] sm:$0xff] }
  0x1f   :  { %1195 = vmatpush3.bf16.msra.mxu1 %v1194_v25  ;;  %1165 = vmatprep.subr.bf16.mxu0 %v1164_v26  ;;  %v145_v0 = vld [vmem:[%s1829_s1 + $0x230] sm:$0xff]  ;;  %v146_v1 = vld [vmem:[%s1829_s1 + $0x238] sm:$0xff]  ;;  %v1212_v3 = vpack.c.bf16 %v162_v60, %v161_v59  ;;  %v48_v4 = vld [vmem:[%s1828_s0 + $0xa8] sm:$0xff] }
  0x20   :  { %1197 = vmatprep.subr.bf16.mxu1 %v1196_v30  ;;  %v46_v2 = vld [vmem:[%s1828_s0 + $0x98] sm:$0xff]  ;;  %v163_v5 = vld [vmem:[%s1829_s1 + $0x2c0] sm:$0xff]  ;;  %v164_v6 = vld [vmem:[%s1829_s1 + $0x2c8] sm:$0xff]  ;;  %v1214_v8 = vpack.c.bf16 %v146_v1, %v145_v0 }
  0x21   :  { %v45_v7 = vld [vmem:[%s1828_s0 + $0x90] sm:$0xff]  ;;  %v47_v9 = vld [vmem:[%s1828_s0 + $0xa0] sm:$0xff]  ;;  %v148_v11 = vld [vmem:[%s1829_s1 + $0x248] sm:$0xff]  ;;  %v1216_v13 = vpack.c.bf16 %v164_v6, %v163_v5 }
  0x22   :  { %1167 = vmatpush3.bf16.msra.mxu0 %v1166_v34  ;;  %v147_v10 = vld [vmem:[%s1829_s1 + $0x240] sm:$0xff]  ;;  %v52_v12 = vld [vmem:[%s1828_s0 + $0xc8] sm:$0xff]  ;;  %v54_v14 = vld [vmem:[%s1828_s0 + $0xd8] sm:$0xff] }
  0x23   :  { %1199 = vmatpush3.bf16.msra.mxu1 %v1198_v35  ;;  %1201 = vmatprep.subr.bf16.mxu0 %v1200_v36  ;;  %v165_v15 = vld [vmem:[%s1829_s1 + $0x2d0] sm:$0xff]  ;;  %v166_v16 = vld [vmem:[%s1829_s1 + $0x2d8] sm:$0xff]  ;;  %v51_v17 = vld [vmem:[%s1828_s0 + $0xc0] sm:$0xff]  ;;  %v1218_v18 = vpack.c.bf16 %v148_v11, %v147_v10 }
  0x24   :  { %1240 = vmatprep.subr.bf16.mxu1 %v1200_v36 }
  0x25   :  { %243 = vmatmul.mubr.f32.vlgmr.msra.gmra.mrb[0].mxu0 %v27_v41 }
  0x26   :  { %348 = vmatmul.mubr.f32.vlgmr.msra.gmra.mrb[0].mxu1 %v29_v43  ;;  %1203 = vmatpush3.bf16.msra.mxu0 %v1202_v42 }
  0x27   :  { %1248 = vmatpush3.bf16.msra.mxu1 %v1202_v42  ;;  %247 = vmatprep.mubr.f32.mxu0 %v34_v46 }
  0x28   :  { %352 = vmatprep.mubr.f32.mxu1 %v36_v48  ;;  %1205 = vmatprep.subr.bf16.mxu0 %v1204_v47 }
  0x29   :  { %248 = vmatmul.mubr.f32.gmra.mrb[2].mxu0 %v33_v51  ;;  %1241 = vmatprep.subr.bf16.mxu1 %v1204_v47 }
  0x2a   :  { %353 = vmatmul.mubr.f32.gmra.mrb[2].mxu1 %v35_v53  ;;  %1207 = vmatpush3.bf16.msra.mxu0 %v1206_v52 }
  0x2b   :  { %1249 = vmatpush3.bf16.msra.mxu1 %v1206_v52  ;;  %252 = vmatprep.mubr.f32.mxu0 %v40_v56 }
  0x2c   :  { %357 = vmatprep.mubr.f32.mxu1 %v42_v58  ;;  %1209 = vmatprep.subr.bf16.mxu0 %v1208_v57 }
  0x2d   :  { %253 = vmatmul.mubr.f32.gmra.mrb[4].mxu0 %v39_v61  ;;  %1242 = vmatprep.subr.bf16.mxu1 %v1208_v57 }
  0x2e   :  { %358 = vmatmul.mubr.f32.gmra.mrb[4].mxu1 %v41_v63  ;;  %1211 = vmatpush3.bf16.msra.mxu0 %v1210_v62 }
  0x2f   :  { %1250 = vmatpush3.bf16.msra.mxu1 %v1210_v62  ;;  %257 = vmatprep.mubr.f32.mxu0 %v46_v2 }
  0x30   :  { %362 = vmatprep.mubr.f32.mxu1 %v48_v4  ;;  %1213 = vmatprep.subr.bf16.mxu0 %v1212_v3 }
  0x31   :  { %258 = vmatmul.mubr.f32.gmra.mrb[6].mxu0 %v45_v7  ;;  %1243 = vmatprep.subr.bf16.mxu1 %v1212_v3 }
  0x32   :  { %363 = vmatmul.mubr.f32.gmra.mrb[6].mxu1 %v47_v9  ;;  %1215 = vmatpush3.bf16.msra.mxu0 %v1214_v8 }
  0x33   :  { %9 = vsyncpa [#allocation10], 0  ;;  %1251 = vmatpush3.bf16.msra.mxu1 %v1214_v8  ;;  %262 = vmatprep.mubr.f32.mxu0 %v52_v12  ;;  %v53_v19 = vld [vmem:[%s1828_s0 + $0xd0] sm:$0xff]  ;;  %v150_v21 = vld [vmem:[%s1829_s1 + $0x258] sm:$0xff]  ;;  %v1220_v23 = vpack.c.bf16 %v166_v16, %v165_v15  ;;  %vm22_vm0 = vcmask 261120   ;;  %v1284_v0 = vmov 0.0  }
  0x34   :  { %v149_v20 = vld [vmem:[%s1829_s1 + $0x250] sm:$0xff]  ;;  %367 = vmatprep.mubr.f32.mxu1 %v54_v14  ;;  %1217 = vmatprep.subr.bf16.mxu0 %v1216_v13  ;;  %v58_v22 = vld [vmem:[%s1828_s0 + $0xf8] sm:$0xff]  ;;  %v60_v24 = vld [vmem:[%s1828_s0 + $0x108] sm:$0xff]  ;;  %24 = vst.msk [vmem:[#allocation3] sm:$0xff] %vm22_vm0, %v1284_v0 }
  0x35   :  { %263 = vmatmul.mubr.f32.gmra.mrb[8].mxu0 %v51_v17  ;;  %1244 = vmatprep.subr.bf16.mxu1 %v1216_v13  ;;  %v167_v25 = vld [vmem:[%s1829_s1 + $0x2e0] sm:$0xff]  ;;  %v168_v26 = vld [vmem:[%s1829_s1 + $0x2e8] sm:$0xff]  ;;  %v57_v27 = vld [vmem:[%s1828_s0 + $0xf0] sm:$0xff]  ;;  %v1222_v28 = vpack.c.bf16 %v150_v21, %v149_v20  ;;  %23 = vst.msk [vmem:[#allocation2] sm:$0xff] %vm22_vm0, %v1284_v0 }
  0x36   :  { %368 = vmatmul.mubr.f32.gmra.mrb[8].mxu1 %v53_v19  ;;  %1219 = vmatpush3.bf16.msra.mxu0 %v1218_v18  ;;  %v59_v29 = vld [vmem:[%s1828_s0 + $0x100] sm:$0xff]  ;;  %v152_v31 = vld [vmem:[%s1829_s1 + $0x268] sm:$0xff]  ;;  %v1224_v33 = vpack.c.bf16 %v168_v26, %v167_v25  ;;  %v66_v34 = vld [vmem:[%s1828_s0 + $0x138] sm:$0xff] }
  0x37   :  { %1252 = vmatpush3.bf16.msra.mxu1 %v1218_v18  ;;  %267 = vmatprep.mubr.f32.mxu0 %v58_v22  ;;  %v151_v30 = vld [vmem:[%s1829_s1 + $0x260] sm:$0xff]  ;;  %v64_v32 = vld [vmem:[%s1828_s0 + $0x128] sm:$0xff]  ;;  %v169_v35 = vld [vmem:[%s1829_s1 + $0x2f0] sm:$0xff] }
  0x38   :  { %372 = vmatprep.mubr.f32.mxu1 %v60_v24  ;;  %1221 = vmatprep.subr.bf16.mxu0 %v1220_v23  ;;  %v170_v36 = vld [vmem:[%s1829_s1 + $0x2f8] sm:$0xff]  ;;  %v63_v37 = vld [vmem:[%s1828_s0 + $0x120] sm:$0xff]  ;;  %v1226_v38 = vpack.c.bf16 %v152_v31, %v151_v30  ;;  %v65_v39 = vld [vmem:[%s1828_s0 + $0x130] sm:$0xff] }
  0x39   :  { %268 = vmatmul.mubr.f32.gmra.mrb[10].mxu0 %v57_v27  ;;  %1245 = vmatprep.subr.bf16.mxu1 %v1220_v23  ;;  %v153_v40 = vld [vmem:[%s1829_s1 + $0x270] sm:$0xff]  ;;  %v154_v41 = vld [vmem:[%s1829_s1 + $0x278] sm:$0xff]  ;;  %v1228_v43 = vpack.c.bf16 %v170_v36, %v169_v35  ;;  %v72_v44 = vld [vmem:[%s1828_s0 + $0x168] sm:$0xff] }
  0x3a   :  { %373 = vmatmul.mubr.f32.gmra.mrb[10].mxu1 %v59_v29  ;;  %1223 = vmatpush3.bf16.msra.mxu0 %v1222_v28  ;;  %v70_v42 = vld [vmem:[%s1828_s0 + $0x158] sm:$0xff]  ;;  %v69_v45 = vld [vmem:[%s1828_s0 + $0x150] sm:$0xff]  ;;  %v1230_v46 = vpack.c.bf16 %v154_v41, %v153_v40  ;;  %v71_v47 = vld [vmem:[%s1828_s0 + $0x160] sm:$0xff] }
  0x3b   :  { %1253 = vmatpush3.bf16.msra.mxu1 %v1222_v28  ;;  %272 = vmatprep.mubr.f32.mxu0 %v64_v32  ;;  %v32_v48 = vld [vmem:[%s1828_s0 + $0x28] sm:$0xff]  ;;  %v31_v50 = vld [vmem:[%s1828_s0 + $0x20] sm:$0xff]  ;;  %v38_v52 = vld [vmem:[%s1828_s0 + $0x58] sm:$0xff] }
  0x3c   :  { %377 = vmatprep.mubr.f32.mxu1 %v66_v34  ;;  %1225 = vmatprep.subr.bf16.mxu0 %v1224_v33  ;;  %v68_v49 = vld [vmem:[%s1828_s0 + $0x148] sm:$0xff]  ;;  %v67_v51 = vld [vmem:[%s1828_s0 + $0x140] sm:$0xff]  ;;  %v74_v53 = vld [vmem:[%s1828_s0 + $0x178] sm:$0xff] }
  0x3d   :  { %273 = vmatmul.mubr.f32.gmra.mrb[12].mxu0 %v63_v37  ;;  %1246 = vmatprep.subr.bf16.mxu1 %v1224_v33  ;;  %v37_v54 = vld [vmem:[%s1828_s0 + $0x50] sm:$0xff]  ;;  %v44_v56 = vld [vmem:[%s1828_s0 + $0x88] sm:$0xff]  ;;  %v43_v57 = vld [vmem:[%s1828_s0 + $0x80] sm:$0xff] }
  0x3e   :  { %378 = vmatmul.mubr.f32.gmra.mrb[12].mxu1 %v65_v39  ;;  %1227 = vmatpush3.bf16.msra.mxu0 %v1226_v38  ;;  %v73_v55 = vld [vmem:[%s1828_s0 + $0x170] sm:$0xff]  ;;  %v50_v58 = vld [vmem:[%s1828_s0 + $0xb8] sm:$0xff]  ;;  %v56_v60 = vld [vmem:[%s1828_s0 + $0xe8] sm:$0xff] }
  0x3f   :  { %1254 = vmatpush3.bf16.msra.mxu1 %v1226_v38  ;;  %277 = vmatprep.mubr.f32.mxu0 %v70_v42  ;;  %v49_v59 = vld [vmem:[%s1828_s0 + $0xb0] sm:$0xff]  ;;  %v55_v61 = vld [vmem:[%s1828_s0 + $0xe0] sm:$0xff]  ;;  %v62_v62 = vld [vmem:[%s1828_s0 + $0x118] sm:$0xff] }
  0x40   :  { %382 = vmatprep.mubr.f32.mxu1 %v72_v44  ;;  %1229 = vmatprep.subr.bf16.mxu0 %v1228_v43  ;;  %v61_v63 = vld [vmem:[%s1828_s0 + $0x110] sm:$0xff]  ;;  %v503_v1 = vld [vmem:[#allocation2] sm:$0xff]  ;;  %v1749_v3 = vld [vmem:[#allocation3] sm:$0xff] }
  0x41   :  { %278 = vmatmul.mubr.f32.gmra.mrb[14].mxu0 %v69_v45  ;;  %1247 = vmatprep.subr.bf16.mxu1 %v1228_v43  ;;  %v505_v2 = vsub.f32 0.0, %v503_v1  ;;  %v652_v8 = vld [vmem:[%s1831_s3] sm:$0xff]  ;;  %v653_v9 = vld [vmem:[%s1831_s3 + $0x8] sm:$0xff]  ;;  %v654_v12 = vld [vmem:[%s1831_s3 + $0x10] sm:$0xff] }
  0x42   :  { %383 = vmatmul.mubr.f32.gmra.mrb[14].mxu1 %v71_v47  ;;  %1231 = vmatpush3.bf16.msra.mxu0 %v1230_v46  ;;  %v1232_v10 = vpack.c.bf16 %v653_v9, %v652_v8  ;;  %v655_v13 = vld [vmem:[%s1831_s3 + $0x18] sm:$0xff]  ;;  %v919_v17 = vld [vmem:[%s1830_s2] ss:$0 sm:$0xff]  ;;  %s1285_s2 = smov [#allocation9]  }
  0x43   :  { %1255 = vmatpush3.bf16.msra.mxu1 %v1230_v46  ;;  %452 = vmatprep.mubr.f32.mxu0 %v32_v48  ;;  %v506_v4 = vadd.f32 %v505_v2, %v1749_v3  ;;  %v1236_v14 = vpack.c.bf16 %v655_v13, %v654_v12  ;;  %s908_s3 = sshll.u32 %s1285_s2, 4  ;;  %s909_s3 = int_to_ptr.vmem [resolvable:$true] %s908_s3 }
  0x44   :  { %482 = vmatprep.mubr.f32.mxu1 %v68_v49  ;;  %1233 = vmatprep.subr.bf16.mxu1 %v1232_v10  ;;  %s1260_s24 = scalar_lea.vmem %s909_s3, 1024  ;;  %p1265_p1 = scmp.lt.s32.totalorder %s909_s3, %s909_s3 }
  0x45   :  { %453 = vmatmul.mubr.f32.vlgmr.msra.gmra.mrb[16].mxu0 %v31_v50  ;;  %v507_v5 = vmul.f32 0.1, %v506_v4  ;;  %p1261_p0 = scmp.ne.s32.totalorder %s909_s3, %s1260_s24  ;;  %p1266_p2 = scmp.lt.s32.totalorder %s1260_s24, %s1260_s24 }
  0x46   :  { %483 = vmatmul.mubr.f32.vlgmr.msra.gmra.mrb[16].mxu1 %v67_v51  ;;  %457 = vmatprep.mubr.f32.mxu0 %v38_v52 }
  0x47   :  { %487 = vmatprep.mubr.f32.mxu1 %v74_v53  ;;  %v508_v6 = vadd.f32 %v507_v5, %v503_v1  ;;  %1235 = vmatpush3.bf16.msra.mxu1 %v1232_v10  ;;  %p1267_p3 = por %p1266_p2, %p1265_p1 }
  0x48   :  { %1237 = vmatprep.subr.bf16.mxu1 %v1236_v14 }
  0x49   :  { %458 = vmatmul.mubr.f32.gmra.mrb[18].mxu0 %v37_v54  ;;  %vm509_vm1 = vcmp.gt.f32.partialorder %v508_v6, 1.0  ;;  %p1268_p4 = pnand %p1267_p3, %p1261_p0 }
  0x4a   :  { %488 = vmatmul.mubr.f32.gmra.mrb[18].mxu1 %v73_v55  ;;  %462 = vmatprep.mubr.f32.mxu0 %v44_v56  ;;  %v510_v7 = vsel %vm509_vm1, 0.0, %v508_v6  ;;  %v920_v11 = vsel %vm509_vm1, 1.0, %v1284_v0 }
  0x4b   :  { %511 = vst.msk [vmem:[#allocation2] sm:$0xff] %vm22_vm0, %v510_v7  ;;  %517 = vst.msk [vmem:[#allocation7] sm:$0xff] %vm22_vm0, %v920_v11  ;;  %1239 = vmatpush3.bf16.msra.mxu1 %v1236_v14 }
  0x4d   :  { %463 = vmatmul.mubr.f32.gmra.mrb[20].mxu0 %v43_v57 }
  0x4e   :  { %467 = vmatprep.mubr.f32.mxu0 %v50_v58 }
  0x51   :  { %468 = vmatmul.mubr.f32.gmra.mrb[22].mxu0 %v49_v59 }
  0x52   :  { %472 = vmatprep.mubr.f32.mxu0 %v56_v60  ;;  %v644_v15 = vld [vmem:[#allocation7] sm:$0xff] }
  0x53   :  { %1124 = vmatprep.mubr.msk.f32.mxu1 %vm22_vm0, %v644_v15 }
  0x55   :  { %473 = vmatmul.mubr.f32.gmra.mrb[24].mxu0 %v55_v61 }
  0x56   :  { %477 = vmatprep.mubr.f32.mxu0 %v62_v62 }
  0x59   :  { %478 = vmatmul.mubr.f32.gmra.mrb[26].mxu0 %v61_v63 }
  0xf8   :  { %v968_v16 = vpop.f32.mrb[0].mxu0 }
  0xf9   :  { %v969_v18 = vpop.f32.mrb[1].mxu0  ;;  %v1024_v19 = vpop.f32.mrb[0].mxu1 }
  0xfa   :  { %v970_v20 = vadd.f32 %v969_v18, %v968_v16  ;;  %v1025_v21 = vpop.f32.mrb[1].mxu1 }
  0xfb   :  { %v1026_v22 = vadd.f32 %v1025_v21, %v1024_v19 }
  0xfc   :  { %v245_v23 = vadd.f32 %v970_v20, %v919_v17  ;;  %v971_v24 = vpop.f32.mrb[2].mxu0 }
  0xfd   :  { %v972_v25 = vpop.f32.mrb[3].mxu0  ;;  %v1027_v26 = vpop.f32.mrb[2].mxu1 }
  0xfe   :  { %v350_v27 = vadd.f32 %v1026_v22, %v245_v23  ;;  %v973_v28 = vadd.f32 %v972_v25, %v971_v24  ;;  %v1028_v29 = vpop.f32.mrb[3].mxu1 }
  0xff   :  { %v1029_v30 = vadd.f32 %v1028_v29, %v1027_v26 }
 0x100   :  { %v250_v31 = vadd.f32 %v973_v28, %v919_v17  ;;  %v974_v32 = vpop.f32.mrb[4].mxu0 }
 0x101   :  { %v975_v33 = vpop.f32.mrb[5].mxu0  ;;  %v1030_v34 = vpop.f32.mrb[4].mxu1 }
 0x102   :  { %v355_v35 = vadd.f32 %v1029_v30, %v250_v31  ;;  %v976_v36 = vadd.f32 %v975_v33, %v974_v32  ;;  %v1031_v37 = vpop.f32.mrb[5].mxu1 }
 0x103   :  { %v1032_v38 = vadd.f32 %v1031_v37, %v1030_v34 }
 0x104   :  { %v255_v39 = vadd.f32 %v976_v36, %v919_v17  ;;  %v977_v40 = vpop.f32.mrb[6].mxu0 }
 0x105   :  { %v978_v41 = vpop.f32.mrb[7].mxu0  ;;  %v1033_v42 = vpop.f32.mrb[6].mxu1 }
 0x106   :  { %v360_v43 = vadd.f32 %v1032_v38, %v255_v39  ;;  %v979_v44 = vadd.f32 %v978_v41, %v977_v40  ;;  %v1034_v45 = vpop.f32.mrb[7].mxu1  ;;  %v512_v39 = vmul.f32 0.8, %v1749_v3 }
 0x107   :  { %v1035_v46 = vadd.f32 %v1034_v45, %v1033_v42 }
 0x108   :  { %v260_v47 = vadd.f32 %v979_v44, %v919_v17  ;;  %v980_v48 = vpop.f32.mrb[8].mxu0 }
 0x109   :  { %v981_v49 = vpop.f32.mrb[9].mxu0  ;;  %v1036_v50 = vpop.f32.mrb[8].mxu1 }
 0x10a   :  { %v365_v51 = vadd.f32 %v1035_v46, %v260_v47  ;;  %v982_v52 = vadd.f32 %v981_v49, %v980_v48  ;;  %v1037_v53 = vpop.f32.mrb[9].mxu1  ;;  %v520_v49 = vld [vmem:[#allocation2] sm:$0xff] }
 0x10b   :  { %v1038_v54 = vadd.f32 %v1037_v53, %v1036_v50  ;;  %v522_v53 = vsub.f32 0.0, %v520_v49 }
 0x10c   :  { %v265_v55 = vadd.f32 %v982_v52, %v919_v17  ;;  %v983_v56 = vpop.f32.mrb[10].mxu0 }
 0x10d   :  { %v984_v57 = vpop.f32.mrb[11].mxu0  ;;  %v1039_v58 = vpop.f32.mrb[10].mxu1 }
 0x10e   :  { %v370_v59 = vadd.f32 %v1038_v54, %v265_v55  ;;  %v985_v60 = vadd.f32 %v984_v57, %v983_v56  ;;  %v1040_v61 = vpop.f32.mrb[11].mxu1 }
 0x10f   :  { %v1041_v62 = vadd.f32 %v1040_v61, %v1039_v58 }
 0x110   :  { %v270_v63 = vadd.f32 %v985_v60, %v919_v17  ;;  %v986_v1 = vpop.f32.mrb[12].mxu0 }
 0x111   :  { %v987_v2 = vpop.f32.mrb[13].mxu0  ;;  %v1042_v4 = vpop.f32.mrb[12].mxu1 }
 0x112   :  { %v375_v5 = vadd.f32 %v1041_v62, %v270_v63  ;;  %v988_v6 = vadd.f32 %v987_v2, %v986_v1  ;;  %v1043_v7 = vpop.f32.mrb[13].mxu1 }
 0x113   :  { %v1044_v8 = vadd.f32 %v1043_v7, %v1042_v4 }
 0x114   :  { %v275_v9 = vadd.f32 %v988_v6, %v919_v17  ;;  %v989_v10 = vpop.f32.mrb[14].mxu0 }
 0x115   :  { %v990_v11 = vpop.f32.mrb[15].mxu0  ;;  %v1045_v12 = vpop.f32.mrb[14].mxu1 }
 0x116   :  { %v380_v13 = vadd.f32 %v1044_v8, %v275_v9  ;;  %v991_v14 = vadd.f32 %v990_v11, %v989_v10  ;;  %v1046_v15 = vpop.f32.mrb[15].mxu1 }
 0x117   :  { %v1047_v16 = vadd.f32 %v1046_v15, %v1045_v12 }
 0x118   :  { %v280_v18 = vadd.f32 %v991_v14, %v919_v17  ;;  %v1080_v19 = vpop.f32.mrb[16].mxu0 }
 0x119   :  { %v1098_v20 = vpop.f32.mrb[16].mxu1  ;;  %v1081_v21 = vpop.f32.mrb[17].mxu0 }
 0x11a   :  { %v385_v22 = vadd.f32 %v1047_v16, %v280_v18  ;;  %v1082_v23 = vadd.f32 %v1081_v21, %v1080_v19  ;;  %v1099_v24 = vpop.f32.mrb[17].mxu1 }
 0x11b   :  { %v1100_v25 = vadd.f32 %v1099_v24, %v1098_v20 }
 0x11c   :  { %v455_v26 = vadd.f32 %v1082_v23, %v350_v27  ;;  %v1083_v28 = vpop.f32.mrb[18].mxu0 }
 0x11d   :  { %v485_v29 = vadd.f32 %v1100_v25, %v380_v13  ;;  %v1101_v30 = vpop.f32.mrb[18].mxu1  ;;  %v1084_v31 = vpop.f32.mrb[19].mxu0 }
 0x11e   :  { %494 = vst.msk [vmem:[#allocation6] sm:$0xff] %vm22_vm0, %v455_v26  ;;  %v1085_v32 = vadd.f32 %v1084_v31, %v1083_v28  ;;  %v1102_v33 = vpop.f32.mrb[19].mxu1 }
 0x11f   :  { %500 = vst.msk [vmem:[#allocation6 + $0x30] sm:$0xff] %vm22_vm0, %v485_v29  ;;  %v1103_v34 = vadd.f32 %v1102_v33, %v1101_v30 }
 0x120   :  { %v460_v17 = vadd.f32 %v1085_v32, %v355_v35  ;;  %v1086_v36 = vpop.f32.mrb[20].mxu0 }
 0x121   :  { %v490_v37 = vadd.f32 %v1103_v34, %v385_v22  ;;  %v1087_v38 = vpop.f32.mrb[21].mxu0 }
 0x122   :  { %495 = vst.msk [vmem:[#allocation6 + $0x8] sm:$0xff] %vm22_vm0, %v460_v17  ;;  %v1088_v27 = vadd.f32 %v1087_v38, %v1086_v36 }
 0x123   :  { %501 = vst.msk [vmem:[#allocation6 + $0x38] sm:$0xff] %vm22_vm0, %v490_v37 }
 0x124   :  { %v465_v40 = vadd.f32 %v1088_v27, %v360_v43  ;;  %v1089_v41 = vpop.f32.mrb[22].mxu0 }
 0x125   :  { %v502_v42 = vld [vmem:[#allocation6] sm:$0xff]  ;;  %v1090_v44 = vpop.f32.mrb[23].mxu0 }
 0x126   :  { %v513_v45 = vadd.f32 %v512_v39, %v502_v42  ;;  %496 = vst.msk [vmem:[#allocation6 + $0x10] sm:$0xff] %vm22_vm0, %v465_v40  ;;  %v1091_v46 = vadd.f32 %v1090_v44, %v1089_v41  ;;  %v609_v44 = vld [vmem:[#allocation6 + $0x30] sm:$0xff] }
 0x128   :  { %514 = vst.msk [vmem:[#allocation3] sm:$0xff] %vm22_vm0, %v513_v45  ;;  %v470_v35 = vadd.f32 %v1091_v46, %v365_v51  ;;  %v1092_v47 = vpop.f32.mrb[24].mxu0 }
 0x129   :  { %v1093_v48 = vpop.f32.mrb[25].mxu0  ;;  %v519_v60 = vld [vmem:[#allocation6 + $0x8] sm:$0xff] }
 0x12a   :  { %497 = vst.msk [vmem:[#allocation6 + $0x18] sm:$0xff] %vm22_vm0, %v470_v35  ;;  %v1094_v3 = vadd.f32 %v1093_v48, %v1092_v47 }
 0x12c   :  { %v475_v50 = vadd.f32 %v1094_v3, %v370_v59  ;;  %v1095_v52 = vpop.f32.mrb[26].mxu0 }
 0x12d   :  { %v1096_v43 = vpop.f32.mrb[27].mxu0  ;;  %v537_v4 = vld [vmem:[#allocation6 + $0x10] sm:$0xff] }
 0x12e   :  { %498 = vst.msk [vmem:[#allocation6 + $0x20] sm:$0xff] %vm22_vm0, %v475_v50  ;;  %v1097_v54 = vadd.f32 %v1096_v43, %v1095_v52 }
 0x12f   :  { %v521_v55 = vld [vmem:[#allocation3] sm:$0xff] }
 0x130   :  { %v529_v56 = vmul.f32 0.8, %v521_v55  ;;  %v480_v57 = vadd.f32 %v1097_v54, %v375_v5  ;;  %v523_v58 = vadd.f32 %v522_v53, %v521_v55  ;;  %v627_v53 = vld [vmem:[#allocation6 + $0x38] sm:$0xff] }
 0x131   :  { %v555_v14 = vld [vmem:[#allocation6 + $0x18] sm:$0xff] }
 0x132   :  { %v530_v61 = vadd.f32 %v529_v56, %v519_v60  ;;  %499 = vst.msk [vmem:[#allocation6 + $0x28] sm:$0xff] %vm22_vm0, %v480_v57  ;;  %v524_v51 = vmul.f32 0.1, %v523_v58 }
 0x134   :  { %531 = vst.msk [vmem:[#allocation3] sm:$0xff] %vm22_vm0, %v530_v61  ;;  %v525_v62 = vadd.f32 %v524_v51, %v520_v49 }
 0x135   :  { %v573_v25 = vld [vmem:[#allocation6 + $0x20] sm:$0xff] }
 0x136   :  { %vm526_vm2 = vcmp.gt.f32.partialorder %v525_v62, 1.0 }
 0x137   :  { %v527_v59 = vsel %vm526_vm2, 0.0, %v525_v62  ;;  %v921_v63 = vsel %vm526_vm2, 1.0, %v1284_v0 }
 0x138   :  { %535 = vst.msk [vmem:[#allocation7 + $0x8] sm:$0xff] %vm22_vm0, %v921_v63  ;;  %528 = vst.msk [vmem:[#allocation2] sm:$0xff] %vm22_vm0, %v527_v59 }
 0x139   :  { %v591_v34 = vld [vmem:[#allocation6 + $0x28] sm:$0xff] }
 0x13b   :  { %v539_v1 = vld [vmem:[#allocation3] sm:$0xff] }
 0x13c   :  { %v547_v2 = vmul.f32 0.8, %v539_v1 }
 0x13e   :  { %v548_v5 = vadd.f32 %v547_v2, %v537_v4 }
 0x13f   :  { %v645_v6 = vld [vmem:[#allocation7 + $0x8] sm:$0xff]  ;;  %v538_v7 = vld [vmem:[#allocation2] sm:$0xff] }
 0x140   :  { %549 = vst.msk [vmem:[#allocation3] sm:$0xff] %vm22_vm0, %v548_v5  ;;  %1125 = vmatmul.mubr.msk.f32.vlgmr.msra.gmra.mrb[20].mxu1 %vm22_vm0, %v645_v6  ;;  %v540_v8 = vsub.f32 0.0, %v538_v7 }
 0x142   :  { %v541_v9 = vadd.f32 %v540_v8, %v539_v1 }
 0x144   :  { %v542_v10 = vmul.f32 0.1, %v541_v9 }
 0x146   :  { %v543_v11 = vadd.f32 %v542_v10, %v538_v7 }
 0x147   :  { %v557_v12 = vld [vmem:[#allocation3] sm:$0xff] }
 0x148   :  { %v565_v13 = vmul.f32 0.8, %v557_v12  ;;  %vm544_vm3 = vcmp.gt.f32.partialorder %v543_v11, 1.0 }
 0x149   :  { %v545_v15 = vsel %vm544_vm3, 0.0, %v543_v11  ;;  %v922_v16 = vsel %vm544_vm3, 1.0, %v1284_v0 }
 0x14a   :  { %v566_v18 = vadd.f32 %v565_v13, %v555_v14  ;;  %546 = vst.msk [vmem:[#allocation2] sm:$0xff] %vm22_vm0, %v545_v15  ;;  %553 = vst.msk [vmem:[#allocation7 + $0x10] sm:$0xff] %vm22_vm0, %v922_v16 }
 0x14c   :  { %567 = vst.msk [vmem:[#allocation3] sm:$0xff] %vm22_vm0, %v566_v18 }
 0x151   :  { %v646_v19 = vld [vmem:[#allocation7 + $0x10] sm:$0xff] }
 0x152   :  { %v556_v20 = vld [vmem:[#allocation2] sm:$0xff]  ;;  %1127 = vmatprep.mubr.msk.f32.mxu1 %vm22_vm0, %v646_v19 }
 0x153   :  { %v558_v21 = vsub.f32 0.0, %v556_v20  ;;  %v575_v22 = vld [vmem:[#allocation3] sm:$0xff] }
 0x154   :  { %v583_v23 = vmul.f32 0.8, %v575_v22 }
 0x155   :  { %v559_v24 = vadd.f32 %v558_v21, %v557_v12 }
 0x156   :  { %v584_v26 = vadd.f32 %v583_v23, %v573_v25 }
 0x157   :  { %v560_v28 = vmul.f32 0.1, %v559_v24 }
 0x158   :  { %585 = vst.msk [vmem:[#allocation3] sm:$0xff] %vm22_vm0, %v584_v26 }
 0x159   :  { %v561_v29 = vadd.f32 %v560_v28, %v556_v20 }
 0x15b   :  { %vm562_vm4 = vcmp.gt.f32.partialorder %v561_v29, 1.0 }
 0x15c   :  { %v563_v30 = vsel %vm562_vm4, 0.0, %v561_v29  ;;  %v923_v31 = vsel %vm562_vm4, 1.0, %v1284_v0 }
 0x15d   :  { %564 = vst.msk [vmem:[#allocation2] sm:$0xff] %vm22_vm0, %v563_v30  ;;  %571 = vst.msk [vmem:[#allocation7 + $0x18] sm:$0xff] %vm22_vm0, %v923_v31 }
 0x15f   :  { %v593_v32 = vld [vmem:[#allocation3] sm:$0xff] }
 0x160   :  { %v601_v33 = vmul.f32 0.8, %v593_v32 }
 0x162   :  { %v602_v17 = vadd.f32 %v601_v33, %v591_v34 }
 0x164   :  { %v647_v36 = vld [vmem:[#allocation7 + $0x18] sm:$0xff]  ;;  %v574_v37 = vld [vmem:[#allocation2] sm:$0xff]  ;;  %603 = vst.msk [vmem:[#allocation3] sm:$0xff] %vm22_vm0, %v602_v17 }
 0x165   :  { %1128 = vmatmul.mubr.msk.f32.gmra.mrb[22].mxu1 %vm22_vm0, %v647_v36  ;;  %v576_v38 = vsub.f32 0.0, %v574_v37 }
 0x167   :  { %v577_v39 = vadd.f32 %v576_v38, %v575_v22 }
 0x169   :  { %v578_v27 = vmul.f32 0.1, %v577_v39 }
 0x16b   :  { %v579_v40 = vadd.f32 %v578_v27, %v574_v37  ;;  %v611_v41 = vld [vmem:[#allocation3] sm:$0xff] }
 0x16c   :  { %v619_v42 = vmul.f32 0.8, %v611_v41 }
 0x16d   :  { %vm580_vm5 = vcmp.gt.f32.partialorder %v579_v40, 1.0 }
 0x16e   :  { %v581_v45 = vsel %vm580_vm5, 0.0, %v579_v40  ;;  %v924_v46 = vsel %vm580_vm5, 1.0, %v1284_v0  ;;  %v620_v35 = vadd.f32 %v619_v42, %v609_v44 }
 0x16f   :  { %582 = vst.msk [vmem:[#allocation2] sm:$0xff] %vm22_vm0, %v581_v45  ;;  %589 = vst.msk [vmem:[#allocation7 + $0x20] sm:$0xff] %vm22_vm0, %v924_v46 }
 0x170   :  { %621 = vst.msk [vmem:[#allocation3] sm:$0xff] %vm22_vm0, %v620_v35 }
 0x176   :  { %v648_v47 = vld [vmem:[#allocation7 + $0x20] sm:$0xff]  ;;  %v592_v48 = vld [vmem:[#allocation2] sm:$0xff] }
 0x177   :  { %1130 = vmatprep.mubr.msk.f32.mxu1 %vm22_vm0, %v648_v47  ;;  %v594_v49 = vsub.f32 0.0, %v592_v48  ;;  %v629_v3 = vld [vmem:[#allocation3] sm:$0xff] }
 0x178   :  { %v637_v52 = vmul.f32 0.8, %v629_v3 }
 0x179   :  { %v595_v50 = vadd.f32 %v594_v49, %v593_v32 }
 0x17a   :  { %v638_v54 = vadd.f32 %v637_v52, %v627_v53 }
 0x17b   :  { %v596_v43 = vmul.f32 0.1, %v595_v50 }
 0x17c   :  { %639 = vst.msk [vmem:[#allocation3] sm:$0xff] %vm22_vm0, %v638_v54 }
 0x17d   :  { %v597_v55 = vadd.f32 %v596_v43, %v592_v48 }
 0x17f   :  { %vm598_vm6 = vcmp.gt.f32.partialorder %v597_v55, 1.0 }
 0x180   :  { %v599_v56 = vsel %vm598_vm6, 0.0, %v597_v55  ;;  %v925_v57 = vsel %vm598_vm6, 1.0, %v1284_v0 }
 0x181   :  { %600 = vst.msk [vmem:[#allocation2] sm:$0xff] %vm22_vm0, %v599_v56  ;;  %607 = vst.msk [vmem:[#allocation7 + $0x28] sm:$0xff] %vm22_vm0, %v925_v57 }
 0x188   :  { %v649_v58 = vld [vmem:[#allocation7 + $0x28] sm:$0xff]  ;;  %v610_v60 = vld [vmem:[#allocation2] sm:$0xff] }
 0x189   :  { %1131 = vmatmul.mubr.msk.f32.gmra.mrb[24].mxu1 %vm22_vm0, %v649_v58  ;;  %v612_v61 = vsub.f32 0.0, %v610_v60 }
 0x18b   :  { %v613_v51 = vadd.f32 %v612_v61, %v611_v41 }
 0x18d   :  { %v614_v62 = vmul.f32 0.1, %v613_v51 }
 0x18f   :  { %v615_v59 = vadd.f32 %v614_v62, %v610_v60 }
 0x191   :  { %vm616_vm7 = vcmp.gt.f32.partialorder %v615_v59, 1.0 }
 0x192   :  { %v617_v63 = vsel %vm616_vm7, 0.0, %v615_v59  ;;  %v926_v1 = vsel %vm616_vm7, 1.0, %v1284_v0 }
 0x193   :  { %618 = vst.msk [vmem:[#allocation2] sm:$0xff] %vm22_vm0, %v617_v63  ;;  %625 = vst.msk [vmem:[#allocation7 + $0x30] sm:$0xff] %vm22_vm0, %v926_v1 }
 0x19a   :  { %v650_v2 = vld [vmem:[#allocation7 + $0x30] sm:$0xff] }
 0x19b   :  { %v628_v4 = vld [vmem:[#allocation2] sm:$0xff]  ;;  %1133 = vmatprep.mubr.msk.f32.mxu1 %vm22_vm0, %v650_v2 }
 0x19c   :  { %v630_v5 = vsub.f32 0.0, %v628_v4 }
 0x19e   :  { %v631_v6 = vadd.f32 %v630_v5, %v629_v3 }
 0x1a0   :  { %v632_v7 = vmul.f32 0.1, %v631_v6 }
 0x1a2   :  { %v633_v8 = vadd.f32 %v632_v7, %v628_v4 }
 0x1a4   :  { %vm634_vm8 = vcmp.gt.f32.partialorder %v633_v8, 1.0 }
 0x1a5   :  { %v635_v9 = vsel %vm634_vm8, 0.0, %v633_v8  ;;  %v927_v10 = vsel %vm634_vm8, 1.0, %v1284_v0 }
 0x1a6   :  { %636 = vst.msk [vmem:[#allocation2] sm:$0xff] %vm22_vm0, %v635_v9  ;;  %643 = vst.msk [vmem:[#allocation7 + $0x38] sm:$0xff] %vm22_vm0, %v927_v10 }
 0x1ad   :  { %v651_v11 = vld [vmem:[#allocation7 + $0x38] sm:$0xff] }
 0x1ae   :  { %1134 = vmatmul.mubr.msk.f32.gmra.mrb[26].mxu1 %vm22_vm0, %v651_v11 }
 0x213   :  { %v1126_v12 = vpop.f32.mrb[20].mxu1 }
 0x214   :  { %v746_v13 = vpop.f32.mrb[21].mxu1 }
 0x215   :  { %v799_v14 = vmul.f32 0.1, %v746_v13  ;;  %v802_v15 = vmul.f32 0.8, %v746_v13 }
 0x217   :  { %804 = vst [vmem:[#allocation9] sm:$0xff] %v799_v14  ;;  %v808_v16 = vadd.f32 %v1126_v12, %v802_v15  ;;  %v810_v18 = vsub.f32 0.0, %v799_v14 }
 0x219   :  { %v811_v19 = vadd.f32 %v810_v18, %v808_v16  ;;  %v815_v0 = vmul.f32 0.8, %v808_v16 }
 0x21b   :  { %v812_v20 = vmul.f32 0.1, %v811_v19 }
 0x21d   :  { %v813_v21 = vadd.f32 %v812_v20, %v799_v14 }
 0x21f   :  { %818 = vst [vmem:[#allocation9 + $0x8] sm:$0xff] %v813_v21  ;;  %v824_v25 = vsub.f32 0.0, %v813_v21 }
 0x238   :  { %v1129_v22 = vpop.f32.mrb[22].mxu1 }
 0x239   :  { %v756_v23 = vpop.f32.mrb[23].mxu1 }
 0x23a   :  { %v822_v24 = vadd.f32 %v815_v0, %v756_v23 }
 0x23c   :  { %v825_v26 = vadd.f32 %v824_v25, %v822_v24  ;;  %v829_v28 = vmul.f32 0.8, %v822_v24 }
 0x23e   :  { %v826_v29 = vmul.f32 0.1, %v825_v26  ;;  %v836_v30 = vadd.f32 %v1129_v22, %v829_v28 }
 0x240   :  { %v827_v31 = vadd.f32 %v826_v29, %v813_v21  ;;  %v843_v37 = vmul.f32 0.8, %v836_v30 }
 0x242   :  { %832 = vst [vmem:[#allocation9 + $0x10] sm:$0xff] %v827_v31  ;;  %v838_v32 = vsub.f32 0.0, %v827_v31 }
 0x244   :  { %v839_v33 = vadd.f32 %v838_v32, %v836_v30 }
 0x246   :  { %v840_v34 = vmul.f32 0.1, %v839_v33 }
 0x248   :  { %v841_v17 = vadd.f32 %v840_v34, %v827_v31 }
 0x24a   :  { %846 = vst [vmem:[#allocation9 + $0x18] sm:$0xff] %v841_v17  ;;  %v852_v27 = vsub.f32 0.0, %v841_v17 }
 0x25c   :  { %v1132_v36 = vpop.f32.mrb[24].mxu1 }
 0x25d   :  { %v766_v38 = vpop.f32.mrb[25].mxu1 }
 0x25e   :  { %v850_v39 = vadd.f32 %v843_v37, %v766_v38 }
 0x260   :  { %v853_v40 = vadd.f32 %v852_v27, %v850_v39  ;;  %v857_v41 = vmul.f32 0.8, %v850_v39 }
 0x262   :  { %v854_v42 = vmul.f32 0.1, %v853_v40  ;;  %v864_v44 = vadd.f32 %v1132_v36, %v857_v41 }
 0x264   :  { %v855_v45 = vadd.f32 %v854_v42, %v841_v17  ;;  %v871_v3 = vmul.f32 0.8, %v864_v44 }
 0x266   :  { %860 = vst [vmem:[#allocation9 + $0x20] sm:$0xff] %v855_v45  ;;  %v866_v46 = vsub.f32 0.0, %v855_v45 }
 0x268   :  { %v867_v35 = vadd.f32 %v866_v46, %v864_v44 }
 0x26a   :  { %v868_v47 = vmul.f32 0.1, %v867_v35 }
 0x26c   :  { %v869_v48 = vadd.f32 %v868_v47, %v855_v45 }
 0x26e   :  { %874 = vst [vmem:[#allocation9 + $0x28] sm:$0xff] %v869_v48  ;;  %v880_v53 = vsub.f32 0.0, %v869_v48 }
 0x281   :  { %v1135_v49 = vpop.f32.mrb[26].mxu1 }
 0x282   :  { %v776_v50 = vpop.f32.mrb[27].mxu1 }
 0x283   :  { %v878_v52 = vadd.f32 %v871_v3, %v776_v50 }
 0x285   :  { %v881_v43 = vadd.f32 %v880_v53, %v878_v52  ;;  %v885_v54 = vmul.f32 0.8, %v878_v52 }
 0x287   :  { %v882_v55 = vmul.f32 0.1, %v881_v43  ;;  %v892_v56 = vadd.f32 %v1135_v49, %v885_v54 }
 0x289   :  { %v883_v57 = vadd.f32 %v882_v55, %v869_v48 }
 0x28b   :  { %888 = vst [vmem:[#allocation9 + $0x30] sm:$0xff] %v883_v57  ;;  %v894_v58 = vsub.f32 0.0, %v883_v57 }
 0x28d   :  { %v895_v60 = vadd.f32 %v894_v58, %v892_v56 }
 0x28f   :  { %v896_v61 = vmul.f32 0.1, %v895_v60 }
 0x291   :  { %v897_v51 = vadd.f32 %v896_v61, %v883_v57 }
 0x293   :  { %902 = vst [vmem:[#allocation9 + $0x38] sm:$0xff] %v897_v51 }
 0x294   :  { %1271 = shalt.err (!%p1268_p4)
}
 0x295   :  { %s1272_s27 = scalar_lea.hbm %s1832_s4, 1024 }
 0x296   :  { %p1273_p5 = scmp.ne.s32.totalorder %s1832_s4, %s1272_s27  ;;  %p1276_p6 = scmp.lt.u32.totalorder %s1272_s27, %s1832_s4 }
 0x298   :  { %p1278_p7 = pnand %p1276_p6, %p1273_p5 }
 0x29a   :  { %1281 = shalt.err (!%p1278_p7)
}
 0x29b   :  { %s1286_s6 = smov 128   ;;  %s1287_s7 = smov 8  }
 0x29c   :  { %914 = dma.vmem_to_hbm [thread:$0]  %s909_s3, 1024, %s1832_s4, [#allocation10], %s1286_s6, %s1286_s6, %s1287_s7  }
 0x29d   :  { %1282 = dma.done.wait [#allocation10], 1024  }
 0x29e   :  { %1283 = vsyncadd [#allocation10], 4294966272 }
 0x29f   :  { %918 = vsyncpa [#allocation10], 1 }

</bundles_post_ra>
